<compile_context>
chip_gen: v7x
topology: tpu7x:2x2x1
jax: 0.10.0
libtpu: 0.0.40
codegen_flags: <defaults>
</compile_context>

<pallas_src>
import functools

import jax
import jax.numpy as jnp
from jax import lax
from jax.experimental import pallas as pl
from jax.experimental.pallas import tpu as pltpu


_VMEM_BUDGET_BYTES = 56 << 20  # conservative: v7x has 64 MiB VMEM per TensorCore


# ------------------------------ Pallas kernel -------------------------------

def _pag_fm_kernel(i0_ref, i1_ref, frac_ref,
                   x_ref, y_ref, aw_ref, wfx_ref, bfx_ref, wfy_ref, bfy_ref,
                   o_ref, yw_ref, *, after_relu):
    """One (batch, row-tile) grid step of PagFM.

    Scalar prefetch (SMEM):
      i0_ref, i1_ref : (H,) int32   2-tap source rows of the bilinear height interp
      frac_ref       : (H,) float32 per-output-row interpolation fraction
    VMEM blocks:
      x_ref  : (C, TP)       high-res tile, TP = tile_h * W, pixels on lanes
      y_ref  : (C, Hy, Wy)   full low-res feature for this batch element
      aw_ref : (Wy, W)       bilinear width-interp weights
      wfx/bfx, wfy/bfy : folded conv+BN of f_x / f_y, shapes (mid, C) / (mid, 1)
      o_ref  : (C, TP)
    Scratch:
      yw_ref : (Hy, C, W) f32 -- width-interpolated (ReLU'd) low-res y, filled
               once per batch element (row-tile index 0) and reused by all tiles.
    """
    C, TP = x_ref.shape
    Hy = y_ref.shape[1]
    W = aw_ref.shape[1]
    TH = TP // W
    h = pl.program_id(1)

    # ---- once per batch: hoisted width interp of the low-res y (MXU) ----
    @pl.when(h == 0)
    def _fill_yw():
        aw = aw_ref[...].astype(jnp.float32)                    # (Wy, W)
        for p in range(Hy):                                     # static unroll
            row = y_ref[:, p, :].astype(jnp.float32)            # (C, Wy)
            if after_relu:
                row = jnp.maximum(row, 0.0)
            yw_ref[p] = jnp.dot(row, aw,
                                preferred_element_type=jnp.float32)   # (C, W)

    # ---- per tile: 2-tap bilinear height interp on the VPU ----
    #   y_up[:, t*W:(t+1)*W] = (1 - frac[g]) * yw[i0[g]] + frac[g] * yw[i1[g]]
    rows = []
    for t in range(TH):                                         # static unroll
        g = h * TH + t                                          # global out row
        r0 = yw_ref[i0_ref[g]]                                  # (C, W)
        r1 = yw_ref[i1_ref[g]]                                  # (C, W)
        f = frac_ref[g]
        rows.append(r0 + f * (r1 - r0))
    y_up = jnp.concatenate(rows, axis=-1)                       # (C, TP)

    # ---- 1x1 convs + folded BN (channel mixing on MXU) ----
    x = x_ref[...].astype(jnp.float32)                          # (C, TP)
    if after_relu:
        x = jnp.maximum(x, 0.0)
    x_k = jnp.dot(wfx_ref[...], x,
                  preferred_element_type=jnp.float32) + bfx_ref[...]   # (mid, TP)
    y_q = jnp.dot(wfy_ref[...], y_up,
                  preferred_element_type=jnp.float32) + bfy_ref[...]   # (mid, TP)

    # ---- similarity gate + blend ----
    sim = jax.nn.sigmoid(jnp.sum(x_k * y_q, axis=0, keepdims=True))    # (1, TP)
    o_ref[...] = (x + sim * (y_up - x)).astype(o_ref.dtype)


# ------------------------------ helpers --------------------------------------

def _bilinear_taps(out_size, in_size):
    """Per-output-row 2-tap bilinear weights, align_corners=False (half-pixel
    centers, edge clamp) -- matches PyTorch F.interpolate."""
    i = jnp.arange(out_size, dtype=jnp.float32)
    src = jnp.maximum((i + 0.5) * (in_size / out_size) - 0.5, 0.0)
    i0f = jnp.minimum(jnp.floor(src), in_size - 1)
    frac = (src - i0f).astype(jnp.float32)
    i0 = i0f.astype(jnp.int32)
    i1 = jnp.minimum(i0 + 1, in_size - 1)
    return i0, i1, frac


def _bilinear_matrix(out_size, in_size, dtype=jnp.float32):
    """(out_size, in_size) bilinear interpolation matrix built from the same taps."""
    i0, i1, frac = _bilinear_taps(out_size, in_size)
    m = (jax.nn.one_hot(i0, in_size, dtype=jnp.float32) * (1.0 - frac)[:, None]
         + jax.nn.one_hot(i1, in_size, dtype=jnp.float32) * frac[:, None])
    return m.astype(dtype)


def _choose_tile_h(C, H, W, itemsize, target_bytes=2 << 20, max_tile_h=256):
    """Largest divisor of H whose (C, th*W) x-tile fits the byte target and
    keeps the lane axis a multiple of 128 (full-height block is always legal)."""
    divisors = [d for d in range(1, H + 1) if H % d == 0]
    aligned = [d for d in divisors if d == H or (d * W) % 128 == 0]
    fitting = [d for d in aligned
               if C * d * W * itemsize <= target_bytes and d <= max_tile_h]
    return max(fitting) if fitting else min(aligned)


def _round_up(v, m):
    return ((v + m - 1) // m) * m


def _vmem_estimate_bytes(C, tile_h, W, Hy, Wy, mid, itemsize):
    """Rough per-grid-step VMEM working set (pipeline buffers + f32 temps)."""
    c8 = _round_up(C, 8)
    m8 = _round_up(mid, 8)
    tp = _round_up(tile_h * W, 128)
    x_blk = c8 * tp * itemsize                                   # one x/out buffer
    y_blk = C * _round_up(Hy, 8) * _round_up(Wy, 128) * itemsize
    yw_scr = Hy * c8 * _round_up(W, 128) * 4                     # f32 scratch
    temps = (4 * c8 + 2 * m8) * tp * 4                           # x, y_up, x_k, y_q, blend
    params = (2 * m8 * _round_up(C, 128) + _round_up(Wy, 8) * _round_up(W, 128)) * 4
    # x and out are double-buffered by the pipeline; y block is resident per batch.
    return 2 * (2 * x_blk) + 2 * y_blk + yw_scr + temps + params


def fold_conv_bn(w_conv, gamma, beta, mean, var, eps=1e-5):
    """Fold eval-mode BN into the 1x1 conv.  w_conv: (mid, C)."""
    scale = gamma / jnp.sqrt(var + eps)                           # (mid,)
    w_eff = (w_conv * scale[:, None]).astype(jnp.float32)         # (mid, C)
    b_eff = ((beta - mean * scale)[:, None]).astype(jnp.float32)  # (mid, 1)
    return w_eff, b_eff


# ------------------------------ forward --------------------------------------

@functools.partial(jax.jit, static_argnames=("after_relu", "tile_h"))
def pag_fm_forward(x, y, w_fx_eff, b_fx_eff, w_fy_eff, b_fy_eff, *,
                   after_relu=False, tile_h=None):
    """PagFM forward.  x: (N, C, H, W)  y: (N, C, Hy, Wy)  -> (N, C, H, W)."""
    N, C, H, W = x.shape
    Ny, Cy, Hy, Wy = y.shape
    assert Ny == N and Cy == C
    mid = w_fx_eff.shape[0]
    assert w_fx_eff.shape == (mid, C) and w_fy_eff.shape == (mid, C)
    assert b_fx_eff.shape == (mid, 1) and b_fy_eff.shape == (mid, 1)

    itemsize = jnp.dtype(x.dtype).itemsize
    if tile_h is None:
        # ~2 MiB x-tiles: safe on v7x (64 MiB VMEM); raise for v5e/v6e if desired.
        tile_h = _choose_tile_h(C, H, W, itemsize)
    assert H % tile_h == 0
    n_ht = H // tile_h
    TP = tile_h * W
    P = H * W

    est = _vmem_estimate_bytes(C, tile_h, W, Hy, Wy, mid, itemsize)
    if est > _VMEM_BUDGET_BYTES:
        raise ValueError(f"PagFM working set ~{est >> 20} MiB exceeds the "
                         f"{_VMEM_BUDGET_BYTES >> 20} MiB VMEM budget; "
                         f"pass a smaller tile_h.")
    vmem_limit = int(min(_VMEM_BUDGET_BYTES, max(est + (4 << 20), 16 << 20)))

    a_w = _bilinear_matrix(W, Wy).T              # (Wy, W)   width-interp weights
    i0, i1, frac = _bilinear_taps(H, Hy)         # (H,) each height-interp taps

    x_flat = x.reshape(N, C, P)                  # free reshape, stays NCHW-ordered

    kernel = functools.partial(_pag_fm_kernel, after_relu=after_relu)

    grid_spec = pltpu.PrefetchScalarGridSpec(
        num_scalar_prefetch=3,                   # i0, i1, frac -> SMEM
        grid=(N, n_ht),
        in_specs=[
            pl.BlockSpec((None, C, TP), lambda n, h, *_: (n, 0, h)),         # x tile
            pl.BlockSpec((None, C, Hy, Wy), lambda n, h, *_: (n, 0, 0, 0)),  # y low-res
            pl.BlockSpec((Wy, W), lambda n, h, *_: (0, 0)),                  # A_w
            pl.BlockSpec((mid, C), lambda n, h, *_: (0, 0)),                 # w_fx
            pl.BlockSpec((mid, 1), lambda n, h, *_: (0, 0)),                 # b_fx
            pl.BlockSpec((mid, C), lambda n, h, *_: (0, 0)),                 # w_fy
            pl.BlockSpec((mid, 1), lambda n, h, *_: (0, 0)),                 # b_fy
        ],
        out_specs=pl.BlockSpec((None, C, TP), lambda n, h, *_: (n, 0, h)),
        scratch_shapes=[pltpu.VMEM((Hy, C, W), jnp.float32)],                # y_w
    )

    out_flat = pl.pallas_call(
        kernel,
        out_shape=jax.ShapeDtypeStruct((N, C, P), x.dtype),
        grid_spec=grid_spec,
        compiler_params=pltpu.CompilerParams(
            # Row-tile axis carries the per-batch y_w scratch -> "arbitrary";
            # batch axis stays "parallel" (v7x megacore shards on batch).
            dimension_semantics=("parallel", "arbitrary"),
            vmem_limit_bytes=vmem_limit),
    )(i0, i1, frac, x_flat, y, a_w, w_fx_eff, b_fx_eff, w_fy_eff, b_fy_eff)

    return out_flat.reshape(N, C, H, W)


# ------------------------------ reference ------------------------------------

def pag_fm_reference(x, y, w_fx_eff, b_fx_eff, w_fy_eff, b_fy_eff, *,
                     after_relu=False):
    """Pure-jnp reference following the PyTorch op order (conv at low res,
    then interpolate), using the same interpolation matrices."""
    N, C, H, W = x.shape
    _, _, Hy, Wy = y.shape
    hp = lax.Precision.HIGHEST
    if after_relu:
        x = jnp.maximum(x, 0.0)
        y = jnp.maximum(y, 0.0)
    a_h = _bilinear_matrix(H, Hy)            # (H, Hy)
    a_wt = _bilinear_matrix(W, Wy)           # (W, Wy)
    y_q_lo = (jnp.einsum('mc,ncpq->nmpq', w_fy_eff, y, precision=hp)
              + b_fy_eff.reshape(1, -1, 1, 1))
    y_q_up = jnp.einsum('ip,nmpq,jq->nmij', a_h, y_q_lo, a_wt, precision=hp)
    y_up = jnp.einsum('ip,ncpq,jq->ncij', a_h, y, a_wt, precision=hp)
    x_k = (jnp.einsum('mc,ncij->nmij', w_fx_eff, x, precision=hp)
           + b_fx_eff.reshape(1, -1, 1, 1))
    sim = jax.nn.sigmoid(jnp.sum(x_k * y_q_up, axis=1, keepdims=True))
    return (1.0 - sim) * x + sim * y_up


# --------------------------------- main ---------------------------------------

def _make_params(key, C, mid):
    k_wx, k_wy = jax.random.split(key)
    w_fx = 0.1 * jax.random.normal(k_wx, (mid, C), jnp.float32)   # f_x conv
    w_fy = 0.1 * jax.random.normal(k_wy, (mid, C), jnp.float32)   # f_y conv
    gamma_x = jnp.linspace(0.5, 1.5, mid, dtype=jnp.float32)
    beta_x = jnp.linspace(-0.1, 0.1, mid, dtype=jnp.float32)
    mean_x = jnp.linspace(-0.2, 0.2, mid, dtype=jnp.float32)
    var_x = jnp.linspace(0.5, 1.0, mid, dtype=jnp.float32)
    gamma_y = jnp.linspace(1.5, 0.5, mid, dtype=jnp.float32)
    beta_y = jnp.linspace(0.1, -0.1, mid, dtype=jnp.float32)
    mean_y = jnp.linspace(0.2, -0.2, mid, dtype=jnp.float32)
    var_y = jnp.linspace(1.0, 0.5, mid, dtype=jnp.float32)
    w_fx_eff, b_fx_eff = fold_conv_bn(w_fx, gamma_x, beta_x, mean_x, var_x)
    w_fy_eff, b_fy_eff = fold_conv_bn(w_fy, gamma_y, beta_y, mean_y, var_y)
    return w_fx_eff, b_fx_eff, w_fy_eff, b_fy_eff


if __name__ == "__main__":
    root = jax.random.PRNGKey(0)

    cases = [
        # name,                      N, C, H,  W,  Hy, Wy, mid, dtype,        tol
        ("2x upsample / f32",        2, 4, 16, 16, 8,  8,  8,  jnp.float32,  2e-2),
        ("non-integer scale / f32",  2, 4, 16, 16, 7,  6,  8,  jnp.float32,  2e-2),
        ("2x upsample / bf16 I/O",   2, 4, 16, 16, 8,  8,  8,  jnp.bfloat16, 7e-2),
    ]

    for idx, (name, N, C, H, W, Hy, Wy, mid, dtype, tol) in enumerate(cases):
        key = jax.random.fold_in(root, idx)
        k_x, k_y, k_p = jax.random.split(key, 3)
        x = jax.random.normal(k_x, (N, C, H, W), jnp.float32).astype(dtype)
        y = jax.random.normal(k_y, (N, C, Hy, Wy), jnp.float32).astype(dtype)
        w_fx_eff, b_fx_eff, w_fy_eff, b_fy_eff = _make_params(k_p, C, mid)

        for after_relu in (False, True):
            out = pag_fm_forward(x, y, w_fx_eff, b_fx_eff, w_fy_eff, b_fy_eff,
                                 after_relu=after_relu)
            jax.block_until_ready(out)
            assert out.shape == (N, C, H, W) and out.dtype == x.dtype
            ref = pag_fm_reference(x, y, w_fx_eff, b_fx_eff, w_fy_eff, b_fy_eff,
                                   after_relu=after_relu)
            err = float(jnp.max(jnp.abs(out.astype(jnp.float32)
                                        - ref.astype(jnp.float32))))
            assert err < tol, f"{name} after_relu={after_relu}: max abs err {err}"

    print("KERNEL_OK")
</pallas_src>

<mosaic_0001>
module attributes {stable_mosaic.version = 11 : i64} {
  func.func @_pag_fm_kernel(%arg0: i32, %arg1: i32, %arg2: memref<16xi32, #tpu.memory_space<smem>>, %arg3: memref<16xi32, #tpu.memory_space<smem>>, %arg4: memref<16xf32, #tpu.memory_space<smem>>, %arg5: memref<1x4x256xf32, #tpu.memory_space<vmem>>, %arg6: memref<1x4x8x8xf32, #tpu.memory_space<vmem>>, %arg7: memref<8x16xf32, #tpu.memory_space<vmem>>, %arg8: memref<8x4xf32, #tpu.memory_space<vmem>>, %arg9: memref<8x1xf32, #tpu.memory_space<vmem>>, %arg10: memref<8x4xf32, #tpu.memory_space<vmem>>, %arg11: memref<8x1xf32, #tpu.memory_space<vmem>>, %arg12: memref<1x4x256xf32, #tpu.memory_space<vmem>>, %arg13: memref<8x4x16xf32, #tpu.memory_space<vmem>>) attributes {dimension_semantics = [#tpu.dimension_semantics<parallel>, #tpu.dimension_semantics<arbitrary>], iteration_bounds = array<i64: 2, 1>, scalar_prefetch = 3 : i64, scratch_operands = 1 : i64, tpu.core_type = #tpu.core_type<tc>, window_params = [{transform_indices = @transform_0, window_bounds = array<i64: 1, 4, 256>}, {transform_indices = @transform_1, window_bounds = array<i64: 1, 4, 8, 8>}, {pipeline_mode = #tpu.pipeline_mode<synchronous>, transform_indices = @transform_2, window_bounds = array<i64: 8, 16>}, {pipeline_mode = #tpu.pipeline_mode<synchronous>, transform_indices = @transform_3, window_bounds = array<i64: 8, 4>}, {pipeline_mode = #tpu.pipeline_mode<synchronous>, transform_indices = @transform_4, window_bounds = array<i64: 8, 1>}, {pipeline_mode = #tpu.pipeline_mode<synchronous>, transform_indices = @transform_5, window_bounds = array<i64: 8, 4>}, {pipeline_mode = #tpu.pipeline_mode<synchronous>, transform_indices = @transform_6, window_bounds = array<i64: 8, 1>}, {transform_indices = @transform_7, window_bounds = array<i64: 1, 4, 256>}]} {
    %c0_i32 = arith.constant 0 : i32
    %0 = arith.cmpi eq, %arg1, %c0_i32 : i32
    %1 = arith.extui %0 : i1 to i32
    %c0_i32_0 = arith.constant 0 : i32
    %2 = arith.cmpi ne, %1, %c0_i32_0 : i32
    scf.if %2 {
      %c0_97 = arith.constant 0 : index
      %c0_98 = arith.constant 0 : index
      %319 = vector.load %arg7[%c0_97, %c0_98] : memref<8x16xf32, #tpu.memory_space<vmem>>, vector<8x16xf32>
      %c0_99 = arith.constant 0 : index
      %c0_100 = arith.constant 0 : index
      %c0_101 = arith.constant 0 : index
      %c0_102 = arith.constant 0 : index
      %320 = vector.load %arg6[%c0_99, %c0_100, %c0_101, %c0_102] : memref<1x4x8x8xf32, #tpu.memory_space<vmem>>, vector<1x4x1x8xf32>
      %321 = vector.shape_cast %320 : vector<1x4x1x8xf32> to vector<4x8xf32>
      %cst_103 = arith.constant dense<0.000000e+00> : vector<4x16xf32>
      %322 = tpu.matmul %321, %319, %cst_103 {dimension_numbers = #tpu.dot_dimension_numbers<[1], [0], [0], [1], [0, 0, 1, 1], [], []>} : vector<4x8xf32>, vector<8x16xf32>, vector<4x16xf32> -> vector<4x16xf32>
      %c0_104 = arith.constant 0 : index
      %c0_105 = arith.constant 0 : index
      %c0_106 = arith.constant 0 : index
      %323 = vector.load %arg13[%c0_104, %c0_105, %c0_106] : memref<8x4x16xf32, #tpu.memory_space<vmem>>, vector<1x4x16xf32>
      %324 = vector.shape_cast %323 : vector<1x4x16xf32> to vector<4x16xf32>
      %325 = vector.shape_cast %322 : vector<4x16xf32> to vector<1x4x16xf32>
      tpu.vector_store %arg13[%c0_104, %c0_105, %c0_106], %325 {strides = array<i32>} : memref<8x4x16xf32, #tpu.memory_space<vmem>>, vector<1x4x16xf32>,
      %c0_107 = arith.constant 0 : index
      %c0_108 = arith.constant 0 : index
      %c1 = arith.constant 1 : index
      %c0_109 = arith.constant 0 : index
      %326 = vector.load %arg6[%c0_107, %c0_108, %c1, %c0_109] : memref<1x4x8x8xf32, #tpu.memory_space<vmem>>, vector<1x4x1x8xf32>
      %327 = vector.shape_cast %326 : vector<1x4x1x8xf32> to vector<4x8xf32>
      %cst_110 = arith.constant dense<0.000000e+00> : vector<4x16xf32>
      %328 = tpu.matmul %327, %319, %cst_110 {dimension_numbers = #tpu.dot_dimension_numbers<[1], [0], [0], [1], [0, 0, 1, 1], [], []>} : vector<4x8xf32>, vector<8x16xf32>, vector<4x16xf32> -> vector<4x16xf32>
      %c1_111 = arith.constant 1 : index
      %c0_112 = arith.constant 0 : index
      %c0_113 = arith.constant 0 : index
      %329 = vector.load %arg13[%c1_111, %c0_112, %c0_113] : memref<8x4x16xf32, #tpu.memory_space<vmem>>, vector<1x4x16xf32>
      %330 = vector.shape_cast %329 : vector<1x4x16xf32> to vector<4x16xf32>
      %331 = vector.shape_cast %328 : vector<4x16xf32> to vector<1x4x16xf32>
      tpu.vector_store %arg13[%c1_111, %c0_112, %c0_113], %331 {strides = array<i32>} : memref<8x4x16xf32, #tpu.memory_space<vmem>>, vector<1x4x16xf32>,
      %c0_114 = arith.constant 0 : index
      %c0_115 = arith.constant 0 : index
      %c2 = arith.constant 2 : index
      %c0_116 = arith.constant 0 : index
      %332 = vector.load %arg6[%c0_114, %c0_115, %c2, %c0_116] : memref<1x4x8x8xf32, #tpu.memory_space<vmem>>, vector<1x4x1x8xf32>
      %333 = vector.shape_cast %332 : vector<1x4x1x8xf32> to vector<4x8xf32>
      %cst_117 = arith.constant dense<0.000000e+00> : vector<4x16xf32>
      %334 = tpu.matmul %333, %319, %cst_117 {dimension_numbers = #tpu.dot_dimension_numbers<[1], [0], [0], [1], [0, 0, 1, 1], [], []>} : vector<4x8xf32>, vector<8x16xf32>, vector<4x16xf32> -> vector<4x16xf32>
      %c2_118 = arith.constant 2 : index
      %c0_119 = arith.constant 0 : index
      %c0_120 = arith.constant 0 : index
      %335 = vector.load %arg13[%c2_118, %c0_119, %c0_120] : memref<8x4x16xf32, #tpu.memory_space<vmem>>, vector<1x4x16xf32>
      %336 = vector.shape_cast %335 : vector<1x4x16xf32> to vector<4x16xf32>
      %337 = vector.shape_cast %334 : vector<4x16xf32> to vector<1x4x16xf32>
      tpu.vector_store %arg13[%c2_118, %c0_119, %c0_120], %337 {strides = array<i32>} : memref<8x4x16xf32, #tpu.memory_space<vmem>>, vector<1x4x16xf32>,
      %c0_121 = arith.constant 0 : index
      %c0_122 = arith.constant 0 : index
      %c3 = arith.constant 3 : index
      %c0_123 = arith.constant 0 : index
      %338 = vector.load %arg6[%c0_121, %c0_122, %c3, %c0_123] : memref<1x4x8x8xf32, #tpu.memory_space<vmem>>, vector<1x4x1x8xf32>
      %339 = vector.shape_cast %338 : vector<1x4x1x8xf32> to vector<4x8xf32>
      %cst_124 = arith.constant dense<0.000000e+00> : vector<4x16xf32>
      %340 = tpu.matmul %339, %319, %cst_124 {dimension_numbers = #tpu.dot_dimension_numbers<[1], [0], [0], [1], [0, 0, 1, 1], [], []>} : vector<4x8xf32>, vector<8x16xf32>, vector<4x16xf32> -> vector<4x16xf32>
      %c3_125 = arith.constant 3 : index
      %c0_126 = arith.constant 0 : index
      %c0_127 = arith.constant 0 : index
      %341 = vector.load %arg13[%c3_125, %c0_126, %c0_127] : memref<8x4x16xf32, #tpu.memory_space<vmem>>, vector<1x4x16xf32>
      %342 = vector.shape_cast %341 : vector<1x4x16xf32> to vector<4x16xf32>
      %343 = vector.shape_cast %340 : vector<4x16xf32> to vector<1x4x16xf32>
      tpu.vector_store %arg13[%c3_125, %c0_126, %c0_127], %343 {strides = array<i32>} : memref<8x4x16xf32, #tpu.memory_space<vmem>>, vector<1x4x16xf32>,
      %c0_128 = arith.constant 0 : index
      %c0_129 = arith.constant 0 : index
      %c4 = arith.constant 4 : index
      %c0_130 = arith.constant 0 : index
      %344 = vector.load %arg6[%c0_128, %c0_129, %c4, %c0_130] : memref<1x4x8x8xf32, #tpu.memory_space<vmem>>, vector<1x4x1x8xf32>
      %345 = vector.shape_cast %344 : vector<1x4x1x8xf32> to vector<4x8xf32>
      %cst_131 = arith.constant dense<0.000000e+00> : vector<4x16xf32>
      %346 = tpu.matmul %345, %319, %cst_131 {dimension_numbers = #tpu.dot_dimension_numbers<[1], [0], [0], [1], [0, 0, 1, 1], [], []>} : vector<4x8xf32>, vector<8x16xf32>, vector<4x16xf32> -> vector<4x16xf32>
      %c4_132 = arith.constant 4 : index
      %c0_133 = arith.constant 0 : index
      %c0_134 = arith.constant 0 : index
      %347 = vector.load %arg13[%c4_132, %c0_133, %c0_134] : memref<8x4x16xf32, #tpu.memory_space<vmem>>, vector<1x4x16xf32>
      %348 = vector.shape_cast %347 : vector<1x4x16xf32> to vector<4x16xf32>
      %349 = vector.shape_cast %346 : vector<4x16xf32> to vector<1x4x16xf32>
      tpu.vector_store %arg13[%c4_132, %c0_133, %c0_134], %349 {strides = array<i32>} : memref<8x4x16xf32, #tpu.memory_space<vmem>>, vector<1x4x16xf32>,
      %c0_135 = arith.constant 0 : index
      %c0_136 = arith.constant 0 : index
      %c5 = arith.constant 5 : index
      %c0_137 = arith.constant 0 : index
      %350 = vector.load %arg6[%c0_135, %c0_136, %c5, %c0_137] : memref<1x4x8x8xf32, #tpu.memory_space<vmem>>, vector<1x4x1x8xf32>
      %351 = vector.shape_cast %350 : vector<1x4x1x8xf32> to vector<4x8xf32>
      %cst_138 = arith.constant dense<0.000000e+00> : vector<4x16xf32>
      %352 = tpu.matmul %351, %319, %cst_138 {dimension_numbers = #tpu.dot_dimension_numbers<[1], [0], [0], [1], [0, 0, 1, 1], [], []>} : vector<4x8xf32>, vector<8x16xf32>, vector<4x16xf32> -> vector<4x16xf32>
      %c5_139 = arith.constant 5 : index
      %c0_140 = arith.constant 0 : index
      %c0_141 = arith.constant 0 : index
      %353 = vector.load %arg13[%c5_139, %c0_140, %c0_141] : memref<8x4x16xf32, #tpu.memory_space<vmem>>, vector<1x4x16xf32>
      %354 = vector.shape_cast %353 : vector<1x4x16xf32> to vector<4x16xf32>
      %355 = vector.shape_cast %352 : vector<4x16xf32> to vector<1x4x16xf32>
      tpu.vector_store %arg13[%c5_139, %c0_140, %c0_141], %355 {strides = array<i32>} : memref<8x4x16xf32, #tpu.memory_space<vmem>>, vector<1x4x16xf32>,
      %c0_142 = arith.constant 0 : index
      %c0_143 = arith.constant 0 : index
      %c6 = arith.constant 6 : index
      %c0_144 = arith.constant 0 : index
      %356 = vector.load %arg6[%c0_142, %c0_143, %c6, %c0_144] : memref<1x4x8x8xf32, #tpu.memory_space<vmem>>, vector<1x4x1x8xf32>
      %357 = vector.shape_cast %356 : vector<1x4x1x8xf32> to vector<4x8xf32>
      %cst_145 = arith.constant dense<0.000000e+00> : vector<4x16xf32>
      %358 = tpu.matmul %357, %319, %cst_145 {dimension_numbers = #tpu.dot_dimension_numbers<[1], [0], [0], [1], [0, 0, 1, 1], [], []>} : vector<4x8xf32>, vector<8x16xf32>, vector<4x16xf32> -> vector<4x16xf32>
      %c6_146 = arith.constant 6 : index
      %c0_147 = arith.constant 0 : index
      %c0_148 = arith.constant 0 : index
      %359 = vector.load %arg13[%c6_146, %c0_147, %c0_148] : memref<8x4x16xf32, #tpu.memory_space<vmem>>, vector<1x4x16xf32>
      %360 = vector.shape_cast %359 : vector<1x4x16xf32> to vector<4x16xf32>
      %361 = vector.shape_cast %358 : vector<4x16xf32> to vector<1x4x16xf32>
      tpu.vector_store %arg13[%c6_146, %c0_147, %c0_148], %361 {strides = array<i32>} : memref<8x4x16xf32, #tpu.memory_space<vmem>>, vector<1x4x16xf32>,
      %c0_149 = arith.constant 0 : index
      %c0_150 = arith.constant 0 : index
      %c7 = arith.constant 7 : index
      %c0_151 = arith.constant 0 : index
      %362 = vector.load %arg6[%c0_149, %c0_150, %c7, %c0_151] : memref<1x4x8x8xf32, #tpu.memory_space<vmem>>, vector<1x4x1x8xf32>
      %363 = vector.shape_cast %362 : vector<1x4x1x8xf32> to vector<4x8xf32>
      %cst_152 = arith.constant dense<0.000000e+00> : vector<4x16xf32>
      %364 = tpu.matmul %363, %319, %cst_152 {dimension_numbers = #tpu.dot_dimension_numbers<[1], [0], [0], [1], [0, 0, 1, 1], [], []>} : vector<4x8xf32>, vector<8x16xf32>, vector<4x16xf32> -> vector<4x16xf32>
      %c7_153 = arith.constant 7 : index
      %c0_154 = arith.constant 0 : index
      %c0_155 = arith.constant 0 : index
      %365 = vector.load %arg13[%c7_153, %c0_154, %c0_155] : memref<8x4x16xf32, #tpu.memory_space<vmem>>, vector<1x4x16xf32>
      %366 = vector.shape_cast %365 : vector<1x4x16xf32> to vector<4x16xf32>
      %367 = vector.shape_cast %364 : vector<4x16xf32> to vector<1x4x16xf32>
      tpu.vector_store %arg13[%c7_153, %c0_154, %c0_155], %367 {strides = array<i32>} : memref<8x4x16xf32, #tpu.memory_space<vmem>>, vector<1x4x16xf32>,
    } else {
    }
    %c16_i32 = arith.constant 16 : i32
    %3 = arith.muli %arg1, %c16_i32 : i32
    %c0_i32_1 = arith.constant 0 : i32
    %4 = arith.addi %3, %c0_i32_1 : i32
    %5 = arith.index_cast %4 : i32 to index
    %6 = memref.load %arg2[%5] : memref<16xi32, #tpu.memory_space<smem>>
    %7 = arith.index_cast %6 : i32 to index
    %c0 = arith.constant 0 : index
    %c0_2 = arith.constant 0 : index
    %8 = vector.load %arg13[%7, %c0, %c0_2] : memref<8x4x16xf32, #tpu.memory_space<vmem>>, vector<1x4x16xf32>
    %9 = vector.shape_cast %8 : vector<1x4x16xf32> to vector<4x16xf32>
    %10 = arith.index_cast %4 : i32 to index
    %11 = memref.load %arg3[%10] : memref<16xi32, #tpu.memory_space<smem>>
    %12 = arith.index_cast %11 : i32 to index
    %c0_3 = arith.constant 0 : index
    %c0_4 = arith.constant 0 : index
    %13 = vector.load %arg13[%12, %c0_3, %c0_4] : memref<8x4x16xf32, #tpu.memory_space<vmem>>, vector<1x4x16xf32>
    %14 = vector.shape_cast %13 : vector<1x4x16xf32> to vector<4x16xf32>
    %15 = arith.index_cast %4 : i32 to index
    %16 = memref.load %arg4[%15] : memref<16xf32, #tpu.memory_space<smem>>
    %17 = arith.subf %14, %9 : vector<4x16xf32>
    %18 = vector.broadcast %16 : f32 to vector<4x16xf32>
    %19 = arith.mulf %18, %17 : vector<4x16xf32>
    %20 = arith.addf %9, %19 : vector<4x16xf32>
    %c16_i32_5 = arith.constant 16 : i32
    %21 = arith.muli %arg1, %c16_i32_5 : i32
    %c1_i32 = arith.constant 1 : i32
    %22 = arith.addi %21, %c1_i32 : i32
    %23 = arith.index_cast %22 : i32 to index
    %24 = memref.load %arg2[%23] : memref<16xi32, #tpu.memory_space<smem>>
    %25 = arith.index_cast %24 : i32 to index
    %c0_6 = arith.constant 0 : index
    %c0_7 = arith.constant 0 : index
    %26 = vector.load %arg13[%25, %c0_6, %c0_7] : memref<8x4x16xf32, #tpu.memory_space<vmem>>, vector<1x4x16xf32>
    %27 = vector.shape_cast %26 : vector<1x4x16xf32> to vector<4x16xf32>
    %28 = arith.index_cast %22 : i32 to index
    %29 = memref.load %arg3[%28] : memref<16xi32, #tpu.memory_space<smem>>
    %30 = arith.index_cast %29 : i32 to index
    %c0_8 = arith.constant 0 : index
    %c0_9 = arith.constant 0 : index
    %31 = vector.load %arg13[%30, %c0_8, %c0_9] : memref<8x4x16xf32, #tpu.memory_space<vmem>>, vector<1x4x16xf32>
    %32 = vector.shape_cast %31 : vector<1x4x16xf32> to vector<4x16xf32>
    %33 = arith.index_cast %22 : i32 to index
    %34 = memref.load %arg4[%33] : memref<16xf32, #tpu.memory_space<smem>>
    %35 = arith.subf %32, %27 : vector<4x16xf32>
    %36 = vector.broadcast %34 : f32 to vector<4x16xf32>
    %37 = arith.mulf %36, %35 : vector<4x16xf32>
    %38 = arith.addf %27, %37 : vector<4x16xf32>
    %c16_i32_10 = arith.constant 16 : i32
    %39 = arith.muli %arg1, %c16_i32_10 : i32
    %c2_i32 = arith.constant 2 : i32
    %40 = arith.addi %39, %c2_i32 : i32
    %41 = arith.index_cast %40 : i32 to index
    %42 = memref.load %arg2[%41] : memref<16xi32, #tpu.memory_space<smem>>
    %43 = arith.index_cast %42 : i32 to index
    %c0_11 = arith.constant 0 : index
    %c0_12 = arith.constant 0 : index
    %44 = vector.load %arg13[%43, %c0_11, %c0_12] : memref<8x4x16xf32, #tpu.memory_space<vmem>>, vector<1x4x16xf32>
    %45 = vector.shape_cast %44 : vector<1x4x16xf32> to vector<4x16xf32>
    %46 = arith.index_cast %40 : i32 to index
    %47 = memref.load %arg3[%46] : memref<16xi32, #tpu.memory_space<smem>>
    %48 = arith.index_cast %47 : i32 to index
    %c0_13 = arith.constant 0 : index
    %c0_14 = arith.constant 0 : index
    %49 = vector.load %arg13[%48, %c0_13, %c0_14] : memref<8x4x16xf32, #tpu.memory_space<vmem>>, vector<1x4x16xf32>
    %50 = vector.shape_cast %49 : vector<1x4x16xf32> to vector<4x16xf32>
    %51 = arith.index_cast %40 : i32 to index
    %52 = memref.load %arg4[%51] : memref<16xf32, #tpu.memory_space<smem>>
    %53 = arith.subf %50, %45 : vector<4x16xf32>
    %54 = vector.broadcast %52 : f32 to vector<4x16xf32>
    %55 = arith.mulf %54, %53 : vector<4x16xf32>
    %56 = arith.addf %45, %55 : vector<4x16xf32>
    %c16_i32_15 = arith.constant 16 : i32
    %57 = arith.muli %arg1, %c16_i32_15 : i32
    %c3_i32 = arith.constant 3 : i32
    %58 = arith.addi %57, %c3_i32 : i32
    %59 = arith.index_cast %58 : i32 to index
    %60 = memref.load %arg2[%59] : memref<16xi32, #tpu.memory_space<smem>>
    %61 = arith.index_cast %60 : i32 to index
    %c0_16 = arith.constant 0 : index
    %c0_17 = arith.constant 0 : index
    %62 = vector.load %arg13[%61, %c0_16, %c0_17] : memref<8x4x16xf32, #tpu.memory_space<vmem>>, vector<1x4x16xf32>
    %63 = vector.shape_cast %62 : vector<1x4x16xf32> to vector<4x16xf32>
    %64 = arith.index_cast %58 : i32 to index
    %65 = memref.load %arg3[%64] : memref<16xi32, #tpu.memory_space<smem>>
    %66 = arith.index_cast %65 : i32 to index
    %c0_18 = arith.constant 0 : index
    %c0_19 = arith.constant 0 : index
    %67 = vector.load %arg13[%66, %c0_18, %c0_19] : memref<8x4x16xf32, #tpu.memory_space<vmem>>, vector<1x4x16xf32>
    %68 = vector.shape_cast %67 : vector<1x4x16xf32> to vector<4x16xf32>
    %69 = arith.index_cast %58 : i32 to index
    %70 = memref.load %arg4[%69] : memref<16xf32, #tpu.memory_space<smem>>
    %71 = arith.subf %68, %63 : vector<4x16xf32>
    %72 = vector.broadcast %70 : f32 to vector<4x16xf32>
    %73 = arith.mulf %72, %71 : vector<4x16xf32>
    %74 = arith.addf %63, %73 : vector<4x16xf32>
    %c16_i32_20 = arith.constant 16 : i32
    %75 = arith.muli %arg1, %c16_i32_20 : i32
    %c4_i32 = arith.constant 4 : i32
    %76 = arith.addi %75, %c4_i32 : i32
    %77 = arith.index_cast %76 : i32 to index
    %78 = memref.load %arg2[%77] : memref<16xi32, #tpu.memory_space<smem>>
    %79 = arith.index_cast %78 : i32 to index
    %c0_21 = arith.constant 0 : index
    %c0_22 = arith.constant 0 : index
    %80 = vector.load %arg13[%79, %c0_21, %c0_22] : memref<8x4x16xf32, #tpu.memory_space<vmem>>, vector<1x4x16xf32>
    %81 = vector.shape_cast %80 : vector<1x4x16xf32> to vector<4x16xf32>
    %82 = arith.index_cast %76 : i32 to index
    %83 = memref.load %arg3[%82] : memref<16xi32, #tpu.memory_space<smem>>
    %84 = arith.index_cast %83 : i32 to index
    %c0_23 = arith.constant 0 : index
    %c0_24 = arith.constant 0 : index
    %85 = vector.load %arg13[%84, %c0_23, %c0_24] : memref<8x4x16xf32, #tpu.memory_space<vmem>>, vector<1x4x16xf32>
    %86 = vector.shape_cast %85 : vector<1x4x16xf32> to vector<4x16xf32>
    %87 = arith.index_cast %76 : i32 to index
    %88 = memref.load %arg4[%87] : memref<16xf32, #tpu.memory_space<smem>>
    %89 = arith.subf %86, %81 : vector<4x16xf32>
    %90 = vector.broadcast %88 : f32 to vector<4x16xf32>
    %91 = arith.mulf %90, %89 : vector<4x16xf32>
    %92 = arith.addf %81, %91 : vector<4x16xf32>
    %c16_i32_25 = arith.constant 16 : i32
    %93 = arith.muli %arg1, %c16_i32_25 : i32
    %c5_i32 = arith.constant 5 : i32
    %94 = arith.addi %93, %c5_i32 : i32
    %95 = arith.index_cast %94 : i32 to index
    %96 = memref.load %arg2[%95] : memref<16xi32, #tpu.memory_space<smem>>
    %97 = arith.index_cast %96 : i32 to index
    %c0_26 = arith.constant 0 : index
    %c0_27 = arith.constant 0 : index
    %98 = vector.load %arg13[%97, %c0_26, %c0_27] : memref<8x4x16xf32, #tpu.memory_space<vmem>>, vector<1x4x16xf32>
    %99 = vector.shape_cast %98 : vector<1x4x16xf32> to vector<4x16xf32>
    %100 = arith.index_cast %94 : i32 to index
    %101 = memref.load %arg3[%100] : memref<16xi32, #tpu.memory_space<smem>>
    %102 = arith.index_cast %101 : i32 to index
    %c0_28 = arith.constant 0 : index
    %c0_29 = arith.constant 0 : index
    %103 = vector.load %arg13[%102, %c0_28, %c0_29] : memref<8x4x16xf32, #tpu.memory_space<vmem>>, vector<1x4x16xf32>
    %104 = vector.shape_cast %103 : vector<1x4x16xf32> to vector<4x16xf32>
    %105 = arith.index_cast %94 : i32 to index
    %106 = memref.load %arg4[%105] : memref<16xf32, #tpu.memory_space<smem>>
    %107 = arith.subf %104, %99 : vector<4x16xf32>
    %108 = vector.broadcast %106 : f32 to vector<4x16xf32>
    %109 = arith.mulf %108, %107 : vector<4x16xf32>
    %110 = arith.addf %99, %109 : vector<4x16xf32>
    %c16_i32_30 = arith.constant 16 : i32
    %111 = arith.muli %arg1, %c16_i32_30 : i32
    %c6_i32 = arith.constant 6 : i32
    %112 = arith.addi %111, %c6_i32 : i32
    %113 = arith.index_cast %112 : i32 to index
    %114 = memref.load %arg2[%113] : memref<16xi32, #tpu.memory_space<smem>>
    %115 = arith.index_cast %114 : i32 to index
    %c0_31 = arith.constant 0 : index
    %c0_32 = arith.constant 0 : index
    %116 = vector.load %arg13[%115, %c0_31, %c0_32] : memref<8x4x16xf32, #tpu.memory_space<vmem>>, vector<1x4x16xf32>
    %117 = vector.shape_cast %116 : vector<1x4x16xf32> to vector<4x16xf32>
    %118 = arith.index_cast %112 : i32 to index
    %119 = memref.load %arg3[%118] : memref<16xi32, #tpu.memory_space<smem>>
    %120 = arith.index_cast %119 : i32 to index
    %c0_33 = arith.constant 0 : index
    %c0_34 = arith.constant 0 : index
    %121 = vector.load %arg13[%120, %c0_33, %c0_34] : memref<8x4x16xf32, #tpu.memory_space<vmem>>, vector<1x4x16xf32>
    %122 = vector.shape_cast %121 : vector<1x4x16xf32> to vector<4x16xf32>
    %123 = arith.index_cast %112 : i32 to index
    %124 = memref.load %arg4[%123] : memref<16xf32, #tpu.memory_space<smem>>
    %125 = arith.subf %122, %117 : vector<4x16xf32>
    %126 = vector.broadcast %124 : f32 to vector<4x16xf32>
    %127 = arith.mulf %126, %125 : vector<4x16xf32>
    %128 = arith.addf %117, %127 : vector<4x16xf32>
    %c16_i32_35 = arith.constant 16 : i32
    %129 = arith.muli %arg1, %c16_i32_35 : i32
    %c7_i32 = arith.constant 7 : i32
    %130 = arith.addi %129, %c7_i32 : i32
    %131 = arith.index_cast %130 : i32 to index
    %132 = memref.load %arg2[%131] : memref<16xi32, #tpu.memory_space<smem>>
    %133 = arith.index_cast %132 : i32 to index
    %c0_36 = arith.constant 0 : index
    %c0_37 = arith.constant 0 : index
    %134 = vector.load %arg13[%133, %c0_36, %c0_37] : memref<8x4x16xf32, #tpu.memory_space<vmem>>, vector<1x4x16xf32>
    %135 = vector.shape_cast %134 : vector<1x4x16xf32> to vector<4x16xf32>
    %136 = arith.index_cast %130 : i32 to index
    %137 = memref.load %arg3[%136] : memref<16xi32, #tpu.memory_space<smem>>
    %138 = arith.index_cast %137 : i32 to index
    %c0_38 = arith.constant 0 : index
    %c0_39 = arith.constant 0 : index
    %139 = vector.load %arg13[%138, %c0_38, %c0_39] : memref<8x4x16xf32, #tpu.memory_space<vmem>>, vector<1x4x16xf32>
    %140 = vector.shape_cast %139 : vector<1x4x16xf32> to vector<4x16xf32>
    %141 = arith.index_cast %130 : i32 to index
    %142 = memref.load %arg4[%141] : memref<16xf32, #tpu.memory_space<smem>>
    %143 = arith.subf %140, %135 : vector<4x16xf32>
    %144 = vector.broadcast %142 : f32 to vector<4x16xf32>
    %145 = arith.mulf %144, %143 : vector<4x16xf32>
    %146 = arith.addf %135, %145 : vector<4x16xf32>
    %c16_i32_40 = arith.constant 16 : i32
    %147 = arith.muli %arg1, %c16_i32_40 : i32
    %c8_i32 = arith.constant 8 : i32
    %148 = arith.addi %147, %c8_i32 : i32
    %149 = arith.index_cast %148 : i32 to index
    %150 = memref.load %arg2[%149] : memref<16xi32, #tpu.memory_space<smem>>
    %151 = arith.index_cast %150 : i32 to index
    %c0_41 = arith.constant 0 : index
    %c0_42 = arith.constant 0 : index
    %152 = vector.load %arg13[%151, %c0_41, %c0_42] : memref<8x4x16xf32, #tpu.memory_space<vmem>>, vector<1x4x16xf32>
    %153 = vector.shape_cast %152 : vector<1x4x16xf32> to vector<4x16xf32>
    %154 = arith.index_cast %148 : i32 to index
    %155 = memref.load %arg3[%154] : memref<16xi32, #tpu.memory_space<smem>>
    %156 = arith.index_cast %155 : i32 to index
    %c0_43 = arith.constant 0 : index
    %c0_44 = arith.constant 0 : index
    %157 = vector.load %arg13[%156, %c0_43, %c0_44] : memref<8x4x16xf32, #tpu.memory_space<vmem>>, vector<1x4x16xf32>
    %158 = vector.shape_cast %157 : vector<1x4x16xf32> to vector<4x16xf32>
    %159 = arith.index_cast %148 : i32 to index
    %160 = memref.load %arg4[%159] : memref<16xf32, #tpu.memory_space<smem>>
    %161 = arith.subf %158, %153 : vector<4x16xf32>
    %162 = vector.broadcast %160 : f32 to vector<4x16xf32>
    %163 = arith.mulf %162, %161 : vector<4x16xf32>
    %164 = arith.addf %153, %163 : vector<4x16xf32>
    %c16_i32_45 = arith.constant 16 : i32
    %165 = arith.muli %arg1, %c16_i32_45 : i32
    %c9_i32 = arith.constant 9 : i32
    %166 = arith.addi %165, %c9_i32 : i32
    %167 = arith.index_cast %166 : i32 to index
    %168 = memref.load %arg2[%167] : memref<16xi32, #tpu.memory_space<smem>>
    %169 = arith.index_cast %168 : i32 to index
    %c0_46 = arith.constant 0 : index
    %c0_47 = arith.constant 0 : index
    %170 = vector.load %arg13[%169, %c0_46, %c0_47] : memref<8x4x16xf32, #tpu.memory_space<vmem>>, vector<1x4x16xf32>
    %171 = vector.shape_cast %170 : vector<1x4x16xf32> to vector<4x16xf32>
    %172 = arith.index_cast %166 : i32 to index
    %173 = memref.load %arg3[%172] : memref<16xi32, #tpu.memory_space<smem>>
    %174 = arith.index_cast %173 : i32 to index
    %c0_48 = arith.constant 0 : index
    %c0_49 = arith.constant 0 : index
    %175 = vector.load %arg13[%174, %c0_48, %c0_49] : memref<8x4x16xf32, #tpu.memory_space<vmem>>, vector<1x4x16xf32>
    %176 = vector.shape_cast %175 : vector<1x4x16xf32> to vector<4x16xf32>
    %177 = arith.index_cast %166 : i32 to index
    %178 = memref.load %arg4[%177] : memref<16xf32, #tpu.memory_space<smem>>
    %179 = arith.subf %176, %171 : vector<4x16xf32>
    %180 = vector.broadcast %178 : f32 to vector<4x16xf32>
    %181 = arith.mulf %180, %179 : vector<4x16xf32>
    %182 = arith.addf %171, %181 : vector<4x16xf32>
    %c16_i32_50 = arith.constant 16 : i32
    %183 = arith.muli %arg1, %c16_i32_50 : i32
    %c10_i32 = arith.constant 10 : i32
    %184 = arith.addi %183, %c10_i32 : i32
    %185 = arith.index_cast %184 : i32 to index
    %186 = memref.load %arg2[%185] : memref<16xi32, #tpu.memory_space<smem>>
    %187 = arith.index_cast %186 : i32 to index
    %c0_51 = arith.constant 0 : index
    %c0_52 = arith.constant 0 : index
    %188 = vector.load %arg13[%187, %c0_51, %c0_52] : memref<8x4x16xf32, #tpu.memory_space<vmem>>, vector<1x4x16xf32>
    %189 = vector.shape_cast %188 : vector<1x4x16xf32> to vector<4x16xf32>
    %190 = arith.index_cast %184 : i32 to index
    %191 = memref.load %arg3[%190] : memref<16xi32, #tpu.memory_space<smem>>
    %192 = arith.index_cast %191 : i32 to index
    %c0_53 = arith.constant 0 : index
    %c0_54 = arith.constant 0 : index
    %193 = vector.load %arg13[%192, %c0_53, %c0_54] : memref<8x4x16xf32, #tpu.memory_space<vmem>>, vector<1x4x16xf32>
    %194 = vector.shape_cast %193 : vector<1x4x16xf32> to vector<4x16xf32>
    %195 = arith.index_cast %184 : i32 to index
    %196 = memref.load %arg4[%195] : memref<16xf32, #tpu.memory_space<smem>>
    %197 = arith.subf %194, %189 : vector<4x16xf32>
    %198 = vector.broadcast %196 : f32 to vector<4x16xf32>
    %199 = arith.mulf %198, %197 : vector<4x16xf32>
    %200 = arith.addf %189, %199 : vector<4x16xf32>
    %c16_i32_55 = arith.constant 16 : i32
    %201 = arith.muli %arg1, %c16_i32_55 : i32
    %c11_i32 = arith.constant 11 : i32
    %202 = arith.addi %201, %c11_i32 : i32
    %203 = arith.index_cast %202 : i32 to index
    %204 = memref.load %arg2[%203] : memref<16xi32, #tpu.memory_space<smem>>
    %205 = arith.index_cast %204 : i32 to index
    %c0_56 = arith.constant 0 : index
    %c0_57 = arith.constant 0 : index
    %206 = vector.load %arg13[%205, %c0_56, %c0_57] : memref<8x4x16xf32, #tpu.memory_space<vmem>>, vector<1x4x16xf32>
    %207 = vector.shape_cast %206 : vector<1x4x16xf32> to vector<4x16xf32>
    %208 = arith.index_cast %202 : i32 to index
    %209 = memref.load %arg3[%208] : memref<16xi32, #tpu.memory_space<smem>>
    %210 = arith.index_cast %209 : i32 to index
    %c0_58 = arith.constant 0 : index
    %c0_59 = arith.constant 0 : index
    %211 = vector.load %arg13[%210, %c0_58, %c0_59] : memref<8x4x16xf32, #tpu.memory_space<vmem>>, vector<1x4x16xf32>
    %212 = vector.shape_cast %211 : vector<1x4x16xf32> to vector<4x16xf32>
    %213 = arith.index_cast %202 : i32 to index
    %214 = memref.load %arg4[%213] : memref<16xf32, #tpu.memory_space<smem>>
    %215 = arith.subf %212, %207 : vector<4x16xf32>
    %216 = vector.broadcast %214 : f32 to vector<4x16xf32>
    %217 = arith.mulf %216, %215 : vector<4x16xf32>
    %218 = arith.addf %207, %217 : vector<4x16xf32>
    %c16_i32_60 = arith.constant 16 : i32
    %219 = arith.muli %arg1, %c16_i32_60 : i32
    %c12_i32 = arith.constant 12 : i32
    %220 = arith.addi %219, %c12_i32 : i32
    %221 = arith.index_cast %220 : i32 to index
    %222 = memref.load %arg2[%221] : memref<16xi32, #tpu.memory_space<smem>>
    %223 = arith.index_cast %222 : i32 to index
    %c0_61 = arith.constant 0 : index
    %c0_62 = arith.constant 0 : index
    %224 = vector.load %arg13[%223, %c0_61, %c0_62] : memref<8x4x16xf32, #tpu.memory_space<vmem>>, vector<1x4x16xf32>
    %225 = vector.shape_cast %224 : vector<1x4x16xf32> to vector<4x16xf32>
    %226 = arith.index_cast %220 : i32 to index
    %227 = memref.load %arg3[%226] : memref<16xi32, #tpu.memory_space<smem>>
    %228 = arith.index_cast %227 : i32 to index
    %c0_63 = arith.constant 0 : index
    %c0_64 = arith.constant 0 : index
    %229 = vector.load %arg13[%228, %c0_63, %c0_64] : memref<8x4x16xf32, #tpu.memory_space<vmem>>, vector<1x4x16xf32>
    %230 = vector.shape_cast %229 : vector<1x4x16xf32> to vector<4x16xf32>
    %231 = arith.index_cast %220 : i32 to index
    %232 = memref.load %arg4[%231] : memref<16xf32, #tpu.memory_space<smem>>
    %233 = arith.subf %230, %225 : vector<4x16xf32>
    %234 = vector.broadcast %232 : f32 to vector<4x16xf32>
    %235 = arith.mulf %234, %233 : vector<4x16xf32>
    %236 = arith.addf %225, %235 : vector<4x16xf32>
    %c16_i32_65 = arith.constant 16 : i32
    %237 = arith.muli %arg1, %c16_i32_65 : i32
    %c13_i32 = arith.constant 13 : i32
    %238 = arith.addi %237, %c13_i32 : i32
    %239 = arith.index_cast %238 : i32 to index
    %240 = memref.load %arg2[%239] : memref<16xi32, #tpu.memory_space<smem>>
    %241 = arith.index_cast %240 : i32 to index
    %c0_66 = arith.constant 0 : index
    %c0_67 = arith.constant 0 : index
    %242 = vector.load %arg13[%241, %c0_66, %c0_67] : memref<8x4x16xf32, #tpu.memory_space<vmem>>, vector<1x4x16xf32>
    %243 = vector.shape_cast %242 : vector<1x4x16xf32> to vector<4x16xf32>
    %244 = arith.index_cast %238 : i32 to index
    %245 = memref.load %arg3[%244] : memref<16xi32, #tpu.memory_space<smem>>
    %246 = arith.index_cast %245 : i32 to index
    %c0_68 = arith.constant 0 : index
    %c0_69 = arith.constant 0 : index
    %247 = vector.load %arg13[%246, %c0_68, %c0_69] : memref<8x4x16xf32, #tpu.memory_space<vmem>>, vector<1x4x16xf32>
    %248 = vector.shape_cast %247 : vector<1x4x16xf32> to vector<4x16xf32>
    %249 = arith.index_cast %238 : i32 to index
    %250 = memref.load %arg4[%249] : memref<16xf32, #tpu.memory_space<smem>>
    %251 = arith.subf %248, %243 : vector<4x16xf32>
    %252 = vector.broadcast %250 : f32 to vector<4x16xf32>
    %253 = arith.mulf %252, %251 : vector<4x16xf32>
    %254 = arith.addf %243, %253 : vector<4x16xf32>
    %c16_i32_70 = arith.constant 16 : i32
    %255 = arith.muli %arg1, %c16_i32_70 : i32
    %c14_i32 = arith.constant 14 : i32
    %256 = arith.addi %255, %c14_i32 : i32
    %257 = arith.index_cast %256 : i32 to index
    %258 = memref.load %arg2[%257] : memref<16xi32, #tpu.memory_space<smem>>
    %259 = arith.index_cast %258 : i32 to index
    %c0_71 = arith.constant 0 : index
    %c0_72 = arith.constant 0 : index
    %260 = vector.load %arg13[%259, %c0_71, %c0_72] : memref<8x4x16xf32, #tpu.memory_space<vmem>>, vector<1x4x16xf32>
    %261 = vector.shape_cast %260 : vector<1x4x16xf32> to vector<4x16xf32>
    %262 = arith.index_cast %256 : i32 to index
    %263 = memref.load %arg3[%262] : memref<16xi32, #tpu.memory_space<smem>>
    %264 = arith.index_cast %263 : i32 to index
    %c0_73 = arith.constant 0 : index
    %c0_74 = arith.constant 0 : index
    %265 = vector.load %arg13[%264, %c0_73, %c0_74] : memref<8x4x16xf32, #tpu.memory_space<vmem>>, vector<1x4x16xf32>
    %266 = vector.shape_cast %265 : vector<1x4x16xf32> to vector<4x16xf32>
    %267 = arith.index_cast %256 : i32 to index
    %268 = memref.load %arg4[%267] : memref<16xf32, #tpu.memory_space<smem>>
    %269 = arith.subf %266, %261 : vector<4x16xf32>
    %270 = vector.broadcast %268 : f32 to vector<4x16xf32>
    %271 = arith.mulf %270, %269 : vector<4x16xf32>
    %272 = arith.addf %261, %271 : vector<4x16xf32>
    %c16_i32_75 = arith.constant 16 : i32
    %273 = arith.muli %arg1, %c16_i32_75 : i32
    %c15_i32 = arith.constant 15 : i32
    %274 = arith.addi %273, %c15_i32 : i32
    %275 = arith.index_cast %274 : i32 to index
    %276 = memref.load %arg2[%275] : memref<16xi32, #tpu.memory_space<smem>>
    %277 = arith.index_cast %276 : i32 to index
    %c0_76 = arith.constant 0 : index
    %c0_77 = arith.constant 0 : index
    %278 = vector.load %arg13[%277, %c0_76, %c0_77] : memref<8x4x16xf32, #tpu.memory_space<vmem>>, vector<1x4x16xf32>
    %279 = vector.shape_cast %278 : vector<1x4x16xf32> to vector<4x16xf32>
    %280 = arith.index_cast %274 : i32 to index
    %281 = memref.load %arg3[%280] : memref<16xi32, #tpu.memory_space<smem>>
    %282 = arith.index_cast %281 : i32 to index
    %c0_78 = arith.constant 0 : index
    %c0_79 = arith.constant 0 : index
    %283 = vector.load %arg13[%282, %c0_78, %c0_79] : memref<8x4x16xf32, #tpu.memory_space<vmem>>, vector<1x4x16xf32>
    %284 = vector.shape_cast %283 : vector<1x4x16xf32> to vector<4x16xf32>
    %285 = arith.index_cast %274 : i32 to index
    %286 = memref.load %arg4[%285] : memref<16xf32, #tpu.memory_space<smem>>
    %287 = arith.subf %284, %279 : vector<4x16xf32>
    %288 = vector.broadcast %286 : f32 to vector<4x16xf32>
    %289 = arith.mulf %288, %287 : vector<4x16xf32>
    %290 = arith.addf %279, %289 : vector<4x16xf32>
    %291 = tpu.concatenate %20, %38, %56, %74, %92, %110, %128, %146, %164, %182, %200, %218, %236, %254, %272, %290 in 1 : vector<4x16xf32>, vector<4x16xf32>, vector<4x16xf32>, vector<4x16xf32>, vector<4x16xf32>, vector<4x16xf32>, vector<4x16xf32>, vector<4x16xf32>, vector<4x16xf32>, vector<4x16xf32>, vector<4x16xf32>, vector<4x16xf32>, vector<4x16xf32>, vector<4x16xf32>, vector<4x16xf32>, vector<4x16xf32> -> vector<4x256xf32>
    %c0_80 = arith.constant 0 : index
    %c0_81 = arith.constant 0 : index
    %c0_82 = arith.constant 0 : index
    %292 = vector.load %arg5[%c0_80, %c0_81, %c0_82] : memref<1x4x256xf32, #tpu.memory_space<vmem>>, vector<1x4x256xf32>
    %293 = vector.shape_cast %292 : vector<1x4x256xf32> to vector<4x256xf32>
    %c0_83 = arith.constant 0 : index
    %c0_84 = arith.constant 0 : index
    %294 = vector.load %arg8[%c0_83, %c0_84] : memref<8x4xf32, #tpu.memory_space<vmem>>, vector<8x4xf32>
    %cst = arith.constant dense<0.000000e+00> : vector<8x256xf32>
    %295 = tpu.matmul %294, %293, %cst {dimension_numbers = #tpu.dot_dimension_numbers<[1], [0], [0], [1], [0, 0, 1, 1], [], []>} : vector<8x4xf32>, vector<4x256xf32>, vector<8x256xf32> -> vector<8x256xf32>
    %c0_85 = arith.constant 0 : index
    %c0_86 = arith.constant 0 : index
    %296 = vector.load %arg9[%c0_85, %c0_86] : memref<8x1xf32, #tpu.memory_space<vmem>>, vector<8x1xf32>
    %297 = vector.broadcast %296 : vector<8x1xf32> to vector<8x256xf32>
    %298 = arith.addf %295, %297 : vector<8x256xf32>
    %c0_87 = arith.constant 0 : index
    %c0_88 = arith.constant 0 : index
    %299 = vector.load %arg10[%c0_87, %c0_88] : memref<8x4xf32, #tpu.memory_space<vmem>>, vector<8x4xf32>
    %cst_89 = arith.constant dense<0.000000e+00> : vector<8x256xf32>
    %300 = tpu.matmul %299, %291, %cst_89 {dimension_numbers = #tpu.dot_dimension_numbers<[1], [0], [0], [1], [0, 0, 1, 1], [], []>} : vector<8x4xf32>, vector<4x256xf32>, vector<8x256xf32> -> vector<8x256xf32>
    %c0_90 = arith.constant 0 : index
    %c0_91 = arith.constant 0 : index
    %301 = vector.load %arg11[%c0_90, %c0_91] : memref<8x1xf32, #tpu.memory_space<vmem>>, vector<8x1xf32>
    %302 = vector.broadcast %301 : vector<8x1xf32> to vector<8x256xf32>
    %303 = arith.addf %300, %302 : vector<8x256xf32>
    %304 = arith.mulf %298, %303 : vector<8x256xf32>
    %cst_92 = arith.constant dense<0.000000e+00> : vector<256xf32>
    %305 = vector.multi_reduction <add>, %304, %cst_92 [0] : vector<8x256xf32> to vector<256xf32>
    %306 = vector.shape_cast %305 : vector<256xf32> to vector<1x256xf32>
    %307 = arith.negf %306 : vector<1x256xf32>
    %308 = math.exp %307 : vector<1x256xf32>
    %cst_93 = arith.constant 1.000000e+00 : f32
    %309 = vector.broadcast %cst_93 : f32 to vector<1x256xf32>
    %310 = arith.addf %309, %308 : vector<1x256xf32>
    %311 = arith.divf %309, %310 : vector<1x256xf32>
    %312 = arith.subf %291, %293 : vector<4x256xf32>
    %313 = vector.broadcast %311 : vector<1x256xf32> to vector<4x256xf32>
    %314 = arith.mulf %313, %312 : vector<4x256xf32>
    %315 = arith.addf %293, %314 : vector<4x256xf32>
    %c0_94 = arith.constant 0 : index
    %c0_95 = arith.constant 0 : index
    %c0_96 = arith.constant 0 : index
    %316 = vector.load %arg12[%c0_94, %c0_95, %c0_96] : memref<1x4x256xf32, #tpu.memory_space<vmem>>, vector<1x4x256xf32>
    %317 = vector.shape_cast %316 : vector<1x4x256xf32> to vector<4x256xf32>
    %318 = vector.shape_cast %315 : vector<4x256xf32> to vector<1x4x256xf32>
    tpu.vector_store %arg12[%c0_94, %c0_95, %c0_96], %318 {strides = array<i32>} : memref<1x4x256xf32, #tpu.memory_space<vmem>>, vector<1x4x256xf32>,
    return
  }
  func.func @transform_0(%arg0: i32, %arg1: i32, %arg2: memref<16xi32, #tpu.memory_space<smem>>, %arg3: memref<16xi32, #tpu.memory_space<smem>>, %arg4: memref<16xf32, #tpu.memory_space<smem>>) -> (i32, i32, i32) {
    %c0_i32 = arith.constant 0 : i32
    %c0_i32_0 = arith.constant 0 : i32
    return %arg0, %c0_i32, %arg1 : i32, i32, i32
  }
  func.func @transform_1(%arg0: i32, %arg1: i32, %arg2: memref<16xi32, #tpu.memory_space<smem>>, %arg3: memref<16xi32, #tpu.memory_space<smem>>, %arg4: memref<16xf32, #tpu.memory_space<smem>>) -> (i32, i32, i32, i32) {
    %c0_i32 = arith.constant 0 : i32
    %c0_i32_0 = arith.constant 0 : i32
    %c0_i32_1 = arith.constant 0 : i32
    %c0_i32_2 = arith.constant 0 : i32
    return %arg0, %c0_i32, %c0_i32_0, %c0_i32_1 : i32, i32, i32, i32
  }
  func.func @transform_2(%arg0: i32, %arg1: i32, %arg2: memref<16xi32, #tpu.memory_space<smem>>, %arg3: memref<16xi32, #tpu.memory_space<smem>>, %arg4: memref<16xf32, #tpu.memory_space<smem>>) -> (i32, i32) {
    %c0_i32 = arith.constant 0 : i32
    %c0_i32_0 = arith.constant 0 : i32
    %c0_i32_1 = arith.constant 0 : i32
    return %c0_i32, %c0_i32_0 : i32, i32
  }
  func.func @transform_3(%arg0: i32, %arg1: i32, %arg2: memref<16xi32, #tpu.memory_space<smem>>, %arg3: memref<16xi32, #tpu.memory_space<smem>>, %arg4: memref<16xf32, #tpu.memory_space<smem>>) -> (i32, i32) {
    %c0_i32 = arith.constant 0 : i32
    %c0_i32_0 = arith.constant 0 : i32
    %c0_i32_1 = arith.constant 0 : i32
    return %c0_i32, %c0_i32_0 : i32, i32
  }
  func.func @transform_4(%arg0: i32, %arg1: i32, %arg2: memref<16xi32, #tpu.memory_space<smem>>, %arg3: memref<16xi32, #tpu.memory_space<smem>>, %arg4: memref<16xf32, #tpu.memory_space<smem>>) -> (i32, i32) {
    %c0_i32 = arith.constant 0 : i32
    %c0_i32_0 = arith.constant 0 : i32
    %c0_i32_1 = arith.constant 0 : i32
    return %c0_i32, %c0_i32_0 : i32, i32
  }
  func.func @transform_5(%arg0: i32, %arg1: i32, %arg2: memref<16xi32, #tpu.memory_space<smem>>, %arg3: memref<16xi32, #tpu.memory_space<smem>>, %arg4: memref<16xf32, #tpu.memory_space<smem>>) -> (i32, i32) {
    %c0_i32 = arith.constant 0 : i32
    %c0_i32_0 = arith.constant 0 : i32
    %c0_i32_1 = arith.constant 0 : i32
    return %c0_i32, %c0_i32_0 : i32, i32
  }
  func.func @transform_6(%arg0: i32, %arg1: i32, %arg2: memref<16xi32, #tpu.memory_space<smem>>, %arg3: memref<16xi32, #tpu.memory_space<smem>>, %arg4: memref<16xf32, #tpu.memory_space<smem>>) -> (i32, i32) {
    %c0_i32 = arith.constant 0 : i32
    %c0_i32_0 = arith.constant 0 : i32
    %c0_i32_1 = arith.constant 0 : i32
    return %c0_i32, %c0_i32_0 : i32, i32
  }
  func.func @transform_7(%arg0: i32, %arg1: i32, %arg2: memref<16xi32, #tpu.memory_space<smem>>, %arg3: memref<16xi32, #tpu.memory_space<smem>>, %arg4: memref<16xf32, #tpu.memory_space<smem>>) -> (i32, i32, i32) {
    %c0_i32 = arith.constant 0 : i32
    %c0_i32_0 = arith.constant 0 : i32
    return %arg0, %c0_i32, %arg1 : i32, i32, i32
  }
}

</mosaic_0001>

<bundles_post_ra>
// kernel: pag_fm_forward.1
= control target key start
LH: loop header
LB: loop body
LE: loop exit
PB: predicated region body
PF: predicated region fallthrough
CT: control target
= control target key end

     0   :  { %s2466_s0 = inlined_call_operand.vmem [shape: s32[16], index: 0, kind: input, shape index: {}]   ;;  %s2467_s3 = inlined_call_operand.vmem [shape: f32[2,4,256], index: 3, kind: input, shape index: {}]   ;;  %s2468_s4 = inlined_call_operand.vmem [shape: f32[2,4,8,8], index: 4, kind: input, shape index: {}]   ;;  %s2469_s5 = inlined_call_operand.vmem [shape: f32[8,16], index: 5, kind: input, shape index: {}]   ;;  %s2470_s6 = inlined_call_operand.vmem [shape: f32[8,4], index: 6, kind: input, shape index: {}]   ;;  %s2471_s7 = inlined_call_operand.vmem [shape: f32[8,1], index: 7, kind: input, shape index: {}]   ;;  %s2472_s8 = inlined_call_operand.vmem [shape: f32[8,4], index: 8, kind: input, shape index: {}]   ;;  %s2473_s9 = inlined_call_operand.vmem [shape: f32[8,1], index: 9, kind: input, shape index: {}]   ;;  %s2474_s10 = inlined_call_operand.vmem [shape: f32[2,4,256], index: 10, kind: output, shape index: {}]   ;;  %s2475_s1 = inlined_call_operand.vmem [shape: s32[16], index: 1, kind: input, shape index: {}]   ;;  %s2476_s2 = inlined_call_operand.vmem [shape: f32[16], index: 2, kind: input, shape index: {}]  }
   0x1   :  { %2487 = sst [smem:[#allocation25_spill]] %s2467_s3  ;;  %s15_s15 = sshll.u32 %s2466_s0, 4  ;;  %s16_s15 = int_to_ptr.vmem [resolvable:$true] %s15_s15 }
   0x2   :  { %2488 = sst [smem:[#allocation26_spill]] %s2468_s4  ;;  %s19_s18 = sshll.u32 %s2475_s1, 4  ;;  %s20_s18 = int_to_ptr.vmem [resolvable:$true] %s19_s18 }
   0x3   :  { %2489 = sst [smem:[#allocation27_spill]] %s2469_s5  ;;  %s1959_s19 = scalar_lea.vmem %s16_s15, 16 }
   0x4   :  { %2490 = sst [smem:[#allocation28_spill]] %s2470_s6  ;;  %p1960_p0 = scmp.ne.s32.totalorder %s16_s15, %s1959_s19 }
   0x5   :  { %2491 = sst [smem:[#allocation29_spill]] %s2471_s7  ;;  %p1964_p1 = scmp.lt.s32.totalorder %s16_s15, %s16_s15 }
   0x6   :  { %2492 = sst [smem:[#allocation30_spill]] %s2472_s8  ;;  %p1965_p2 = scmp.lt.s32.totalorder %s1959_s19, %s1959_s19 }
   0x7   :  { %2493 = sst [smem:[#allocation31_spill]] %s2473_s9 }
   0x8   :  { %2494 = sst [smem:[#allocation32_spill]] %s2474_s10  ;;  %p1966_p3 = por %p1965_p2, %p1964_p1 }
   0xa   :  { %p1967_p4 = pnand %p1966_p3, %p1960_p0 }
   0xc   :  { %1970 = shalt.err (!%p1967_p4)  }
   0xd   :  { %s2021_s20 = smov [#allocation4]   ;;  %s1971_s21 = scalar_lea.vmem %s20_s18, 16 }
   0xe   :  { %18 = dma.vmem_to_smem %s16_s15, 16, %s2021_s20, [#allocation3] }
   0xf   :  { %p1972_p5 = scmp.ne.s32.totalorder %s20_s18, %s1971_s21  ;;  %p1976_p6 = scmp.lt.s32.totalorder %s20_s18, %s20_s18 }
  0x10   :  { %p1977_p7 = scmp.lt.s32.totalorder %s1971_s21, %s1971_s21 }
  0x12   :  { %p1978_p8 = por %p1977_p7, %p1976_p6 }
  0x14   :  { %p1979_p9 = pnand %p1978_p8, %p1972_p5 }
  0x16   :  { %1982 = shalt.err (!%p1979_p9)  }
  0x17   :  { %s2022_s0 = smov [#allocation5]   ;;  %s23_s23 = sshll.u32 %s2476_s2, 4  ;;  %s24_s23 = int_to_ptr.vmem [resolvable:$true] %s23_s23 }
  0x18   :  { %22 = dma.vmem_to_smem %s20_s18, 16, %s2022_s0, [#allocation3] }
  0x19   :  { %s1983_s24 = scalar_lea.vmem %s24_s23, 16  ;;  %p1988_p11 = scmp.lt.s32.totalorder %s24_s23, %s24_s23 }
  0x1a   :  { %p1984_p10 = scmp.ne.s32.totalorder %s24_s23, %s1983_s24  ;;  %p1989_p12 = scmp.lt.s32.totalorder %s1983_s24, %s1983_s24 }
  0x1c   :  { %p1990_p13 = por %p1989_p12, %p1988_p11 }
  0x1e   :  { %p1991_p0 = pnand %p1990_p13, %p1984_p10 }
  0x20   :  { %1994 = shalt.err (!%p1991_p0)  }
  0x21   :  { %s2023_s25 = smov [#allocation6]  }
  0x22   :  { %26 = dma.vmem_to_smem %s24_s23, 16, %s2023_s25, [#allocation3] }
  0x23   :  { %2007 = dma.done.wait [#allocation3], 48 }
  0x24   :  { %2008 = vsyncadd [#allocation3], 4294967248 }
  0x25   :  { %28 = sfence }
  0x26   :  { %s2098_s26 = smov 0   ;;  %s2100_s27 = smov 0  }
  0x27   :  { %s2102_s28 = smov 0  }
  0x28 LB: > { %2495 = sst [smem:[#allocation8_spill]] %s2015_s27  ;;  %s46_s2 = sadd.s32 1, %s2015_s27  ;;  %s2019_s28 = sphi %s2102_s28, %s34_s28   ;;  %s2015_s27 = sphi %s2100_s27, %s2557_s27   ;;  %s2011_s26 = sphi %s2098_s26, %s2556_s26  }
  0x29   : > { %2496 = sst [smem:[#allocation9_spill]] %s2019_s28  ;;  %p1750_p1 = scmp.ge.s32.totalorder %s2019_s28, 1 }
  0x2a   : > { %p48_p2 = scmp.ge.s32.totalorder %s46_s2, 2  ;;  %p285_p3 = scmp.lt.s32.totalorder %s2019_s28, 3 }
  0x2c   : > { %s2559_s2 = smov (%p48_p2, %s46_s2), 0  ;;  %p286_p4 = pnand %p1750_p1, %p285_p3 }
  0x2d   : > { %2497 = sst [smem:[#allocation10_spill]] %s2559_s2 }
  0x2e   : > { %289 = sbr.rel (%p286_p4) target bundleno = 720 (0x2d0), region = 48 }
  0x35   : > { %s2498_s5 = sld [smem:[#allocation27_spill]]  ;;  %p331_p5 = scmp.lt.s32.totalorder %s2011_s26, 1  ;;  %v2024_v1 = vmov 0.0   ;;  %vm2025_vm0 = vmmov 0   ;;  %vm369_vm1 = vcmask 1041409   ;;  %vm372_vm2 = vcmask 1042434  }
  0x36   : > { %1871 = vmatprep.subr.mxu0 %v2024_v1  ;;  %1876 = vmatprep.subr.mxu1 %v2024_v1  ;;  %s2500_s4 = sld [smem:[#allocation26_spill]]  ;;  %vm375_vm3 = vcmask 1043459   ;;  %vm377_vm4 = vcmask 64512   ;;  %s2227_s15 = sld [smem:[#allocation4 + $0xa]]  ;;  %vm450_vm5 = vcmask 125952   ;;  %vm1383_vm6 = vcmask 1043456  }
  0x37   : > { %1873 = vmatprep.mubr.msk.f32.mxu0 %vm2025_vm0, %v2024_v1  ;;  %s2561_s26 = smov (!%p331_p5, %s2011_s26), 1  ;;  %1878 = vmatprep.mubr.msk.f32.mxu1 %vm2025_vm0, %v2024_v1  ;;  %s2229_s16 = sld [smem:[#allocation5 + $0xa]]  ;;  %vm1379_vm7 = vcmask 31744   ;;  %vm1348_vm8 = vcmask 130048   ;;  %vm1350_vm9 = vcmask 261120   ;;  %vm1352_vm10 = vcmask 392192  }
  0x38   : > { %2499 = sst [smem:[#allocation11_spill]] %s2561_s26  ;;  %s1853_s11 = sshll.u32 %s2561_s26, 5  ;;  %vm1354_vm11 = vcmask 523264   ;;  %vm1356_vm12 = vcmask 654336   ;;  %vm1358_vm13 = vcmask 785408   ;;  %vm1360_vm14 = vcmask 916480  }
  0x39   : > { %s2231_s17 = sld [smem:[#allocation4 + $0x9]]  ;;  %s2235_s19 = sld [smem:[#allocation4 + $0x2]] }
  0x3a   : > { %s2233_s18 = sld [smem:[#allocation5 + $0x9]]  ;;  %s2237_s20 = sld [smem:[#allocation5 + $0x2]] }
  0x3b   : > { %v2119_v0 = vld [vmem:[%s2498_s5] sm:$0xff]  ;;  %s2239_s21 = sld [smem:[#allocation4 + $0x1]]  ;;  %s2243_s1 = sld [smem:[#allocation6 + $0xa]] }
  0x3c   : > { %1872 = vmatpush3.msra.mxu0 %v2119_v0  ;;  %1877 = vmatpush3.msra.mxu1 %v2119_v0  ;;  %s2137_s14 = scalar_lea.vmem %s2500_s4, %s1853_s11  ;;  %s2241_s0 = sld [smem:[#allocation5 + $0x1]] }
  0x3d   : > { %1881 = vmatprep.subr.mxu0 %v2024_v1  ;;  %1886 = vmatprep.subr.mxu1 %v2024_v1  ;;  %v360_v2 = vld [vmem:[%s2137_s14] sm:$0x1]  ;;  %v361_v3 = vld [vmem:[%s2137_s14 + $0x8] sm:$0x1]  ;;  %v362_v4 = vld [vmem:[%s2137_s14 + $0x10] sm:$0x1] }
  0x3e   : > { %v363_v5 = vld [vmem:[%s2137_s14 + $0x18] sm:$0x1]  ;;  %v368_v6 = vrot.slane %v361_v3, 7  ;;  %v371_v7 = vrot.slane %v362_v4, 6  ;;  %v452_v8 = vld [vmem:[%s2137_s14 + $0x1] sm:$0x1] }
  0x3f   : > { %v374_v9 = vrot.slane %v363_v5, 5  ;;  %v453_v10 = vld [vmem:[%s2137_s14 + $0x9] sm:$0x1]  ;;  %v454_v11 = vld [vmem:[%s2137_s14 + $0x11] sm:$0x1]  ;;  %s2245_s22 = sld [smem:[#allocation4 + $0x3]] }
  0x40   : > { %v370_v12 = vsel %vm369_vm1, %v368_v6, %v360_v2  ;;  %v455_v13 = vld [vmem:[%s2137_s14 + $0x19] sm:$0x1]  ;;  %v460_v14 = vrot.slane %v453_v10, 7  ;;  %v462_v15 = vrot.slane %v454_v11, 6  ;;  %v540_v16 = vld [vmem:[%s2137_s14 + $0x2] sm:$0x1] }
  0x41   : > { %v373_v17 = vsel %vm372_vm2, %v371_v7, %v370_v12  ;;  %v464_v18 = vrot.slane %v455_v13, 5  ;;  %v541_v19 = vld [vmem:[%s2137_s14 + $0xa] sm:$0x1]  ;;  %v542_v20 = vld [vmem:[%s2137_s14 + $0x12] sm:$0x1]  ;;  %s2248_s24 = sld [smem:[#allocation6 + $0x9]] }
  0x42   : > { %v376_v21 = vsel %vm375_vm3, %v374_v9, %v373_v17  ;;  %v461_v22 = vsel %vm369_vm1, %v460_v14, %v452_v8  ;;  %v543_v23 = vld [vmem:[%s2137_s14 + $0x1a] sm:$0x1]  ;;  %v548_v24 = vrot.slane %v541_v19, 7  ;;  %v550_v25 = vrot.slane %v542_v20, 6  ;;  %v628_v26 = vld [vmem:[%s2137_s14 + $0x3] sm:$0x1] }
  0x43   : > { %1874 = vmatmul.mubr.msk.f32.vlgmr.msra.gmra.mrb[0].mxu0 %vm377_vm4, %v376_v21  ;;  %v463_v27 = vsel %vm372_vm2, %v462_v15, %v461_v22  ;;  %v552_v28 = vrot.slane %v543_v23, 5  ;;  %v629_v29 = vld [vmem:[%s2137_s14 + $0xb] sm:$0x1]  ;;  %v630_v30 = vld [vmem:[%s2137_s14 + $0x13] sm:$0x1]  ;;  %s2251_s29 = sld [smem:[#allocation6 + $0x2]] }
  0x44   : > { %v465_v31 = vsel %vm375_vm3, %v464_v18, %v463_v27  ;;  %1882 = vmatpush3.msra.mxu0 %v2119_v0  ;;  %1883 = vmatprep.mubr.msk.f32.mxu0 %vm2025_vm0, %v2024_v1  ;;  %v549_v32 = vsel %vm369_vm1, %v548_v24, %v540_v16  ;;  %v631_v33 = vld [vmem:[%s2137_s14 + $0x1b] sm:$0x1]  ;;  %v636_v34 = vrot.slane %v629_v29, 7  ;;  %v638_v35 = vrot.slane %v630_v30, 6  ;;  %v716_v36 = vld [vmem:[%s2137_s14 + $0x4] sm:$0x1] }
  0x45   : > { %1879 = vmatmul.mubr.msk.f32.vlgmr.msra.gmra.mrb[0].mxu1 %vm377_vm4, %v465_v31  ;;  %v551_v37 = vsel %vm372_vm2, %v550_v25, %v549_v32  ;;  %v640_v38 = vrot.slane %v631_v33, 5  ;;  %1891 = vmatprep.subr.mxu0 %v2024_v1  ;;  %v717_v39 = vld [vmem:[%s2137_s14 + $0xc] sm:$0x1]  ;;  %v718_v40 = vld [vmem:[%s2137_s14 + $0x14] sm:$0x1]  ;;  %s2259_s5 = sld [smem:[#allocation5 + $0x3]] }
  0x46   : > { %1887 = vmatpush3.msra.mxu1 %v2119_v0  ;;  %1888 = vmatprep.mubr.msk.f32.mxu1 %vm2025_vm0, %v2024_v1  ;;  %v553_v41 = vsel %vm375_vm3, %v552_v28, %v551_v37  ;;  %v637_v42 = vsel %vm369_vm1, %v636_v34, %v628_v26  ;;  %v719_v43 = vld [vmem:[%s2137_s14 + $0x1c] sm:$0x1]  ;;  %v724_v44 = vrot.slane %v717_v39, 7  ;;  %v726_v45 = vrot.slane %v718_v40, 6  ;;  %v804_v46 = vld [vmem:[%s2137_s14 + $0x5] sm:$0x1] }
  0x47   : > { %1884 = vmatmul.mubr.msk.f32.vlgmr.msra.gmra.mrb[2].mxu0 %vm377_vm4, %v553_v41  ;;  %v639_v47 = vsel %vm372_vm2, %v638_v35, %v637_v42  ;;  %1896 = vmatprep.subr.mxu1 %v2024_v1  ;;  %v728_v48 = vrot.slane %v719_v43, 5  ;;  %v805_v49 = vld [vmem:[%s2137_s14 + $0xd] sm:$0x1]  ;;  %v806_v50 = vld [vmem:[%s2137_s14 + $0x15] sm:$0x1]  ;;  %s2262_s27 = sld [smem:[#allocation4 + $0xb]]  ;;  %v1205_v40 = vstv %s2248_s24 }
  0x48   : > { %v641_v51 = vsel %vm375_vm3, %v640_v38, %v639_v47  ;;  %1892 = vmatpush3.msra.mxu0 %v2119_v0  ;;  %1893 = vmatprep.mubr.msk.f32.mxu0 %vm2025_vm0, %v2024_v1  ;;  %v725_v52 = vsel %vm369_vm1, %v724_v44, %v716_v36  ;;  %v807_v53 = vld [vmem:[%s2137_s14 + $0x1d] sm:$0x1]  ;;  %v812_v54 = vrot.slane %v805_v49, 7  ;;  %v814_v55 = vrot.slane %v806_v50, 6  ;;  %v892_v56 = vld [vmem:[%s2137_s14 + $0x6] sm:$0x1] }
  0x49   : > { %1889 = vmatmul.mubr.msk.f32.vlgmr.msra.gmra.mrb[2].mxu1 %vm377_vm4, %v641_v51  ;;  %v727_v57 = vsel %vm372_vm2, %v726_v45, %v725_v52  ;;  %v816_v58 = vrot.slane %v807_v53, 5  ;;  %1901 = vmatprep.subr.mxu0 %v2024_v1  ;;  %v893_v59 = vld [vmem:[%s2137_s14 + $0xe] sm:$0x1]  ;;  %v894_v60 = vld [vmem:[%s2137_s14 + $0x16] sm:$0x1]  ;;  %s2264_s28 = sld [smem:[#allocation5 + $0xb]]  ;;  %v1219_v36 = vstv %s2243_s1  ;;  %v1107_v45 = vstv %s2251_s29 }
  0x4a   : > { %1897 = vmatpush3.msra.mxu1 %v2119_v0  ;;  %1898 = vmatprep.mubr.msk.f32.mxu1 %vm2025_vm0, %v2024_v1  ;;  %v729_v61 = vsel %vm375_vm3, %v728_v48, %v727_v57  ;;  %v813_v62 = vsel %vm369_vm1, %v812_v54, %v804_v46  ;;  %v895_v63 = vld [vmem:[%s2137_s14 + $0x1e] sm:$0x1]  ;;  %v900_v2 = vrot.slane %v893_v59, 7  ;;  %v902_v3 = vrot.slane %v894_v60, 6  ;;  %v980_v4 = vld [vmem:[%s2137_s14 + $0x7] sm:$0x1] }
  0x4b   : > { %1894 = vmatmul.mubr.msk.f32.vlgmr.msra.gmra.mrb[4].mxu0 %vm377_vm4, %v729_v61  ;;  %v815_v5 = vsel %vm372_vm2, %v814_v55, %v813_v62  ;;  %1906 = vmatprep.subr.mxu1 %v2024_v1  ;;  %v904_v6 = vrot.slane %v895_v63, 5  ;;  %v981_v7 = vld [vmem:[%s2137_s14 + $0xf] sm:$0x1]  ;;  %v982_v8 = vld [vmem:[%s2137_s14 + $0x17] sm:$0x1]  ;;  %s2266_s23 = sld [smem:[#allocation4 + $0x4]] }
  0x4c   : > { %v817_v9 = vsel %vm375_vm3, %v816_v58, %v815_v5  ;;  %1902 = vmatpush3.msra.mxu0 %v2119_v0  ;;  %1903 = vmatprep.mubr.msk.f32.mxu0 %vm2025_vm0, %v2024_v1  ;;  %v901_v10 = vsel %vm369_vm1, %v900_v2, %v892_v56  ;;  %v983_v11 = vld [vmem:[%s2137_s14 + $0x1f] sm:$0x1]  ;;  %v988_v12 = vrot.slane %v981_v7, 7  ;;  %v990_v13 = vrot.slane %v982_v8, 6  ;;  %s2268_s25 = sld [smem:[#allocation6 + $0x1]]  ;;  %s2271_s14 = sld [smem:[#allocation6 + $0x3]] }
  0x4d   : > { %1899 = vmatmul.mubr.msk.f32.vlgmr.msra.gmra.mrb[4].mxu1 %vm377_vm4, %v817_v9  ;;  %v903_v14 = vsel %vm372_vm2, %v902_v3, %v901_v10  ;;  %v992_v15 = vrot.slane %v983_v11, 5  ;;  %s2273_s2 = sld [smem:[#allocation6 + $0xb]]  ;;  %s2275_s4 = sld [smem:[#allocation5 + $0x4]] }
  0x4e   : > { %1907 = vmatpush3.msra.mxu1 %v2119_v0  ;;  %1908 = vmatprep.mubr.msk.f32.mxu1 %vm2025_vm0, %v2024_v1  ;;  %v905_v16 = vsel %vm375_vm3, %v904_v6, %v903_v14  ;;  %v989_v17 = vsel %vm369_vm1, %v988_v12, %v980_v4  ;;  %s2278_s13 = sld [smem:[#allocation4 + $0xc]]  ;;  %s2292_s6 = sld [smem:[#allocation4 + $0x5]] }
  0x4f   : > { %1904 = vmatmul.mubr.msk.f32.vlgmr.msra.gmra.mrb[6].mxu0 %vm377_vm4, %v905_v16  ;;  %v991_v18 = vsel %vm372_vm2, %v990_v13, %v989_v17  ;;  %2501 = sst [smem:[#allocation12_spill]] %s2264_s28  ;;  %s2294_s11 = sld [smem:[#allocation5 + $0x5]] }
  0x50   : > { %v993_v19 = vsel %vm375_vm3, %v992_v15, %v991_v18  ;;  %1452 = vmatprep.mubr.f32.mxu0 %v2024_v1  ;;  %s2280_s12 = sld [smem:[#allocation5 + $0xc]]  ;;  %s2301_s26 = sld [smem:[#allocation4 + $0xd]] }
  0x51   : > { %1909 = vmatmul.mubr.msk.f32.vlgmr.msra.gmra.mrb[6].mxu1 %vm377_vm4, %v993_v19  ;;  %2502 = sst [smem:[#allocation13_spill]] %s2266_s23  ;;  %s2284_s30 = sld [smem:[#allocation6 + $0x4]] }
  0x52   : > { %1539 = vmatprep.mubr.f32.mxu1 %v2024_v1  ;;  %2503 = sst [smem:[#allocation14_spill]] %s2271_s14  ;;  %s2286_s10 = sld [smem:[#allocation6 + $0xc]]  ;;  %v1093_v51 = vstv %s2268_s25 }
  0x53   : > { %2504 = sst [smem:[#allocation15_spill]] %s2273_s2  ;;  %s2303_s9 = sld [smem:[#allocation5 + $0xd]] }
  0x54   : > { %2505 = sst [smem:[#allocation16_spill]] %s2275_s4  ;;  %s2309_s8 = sld [smem:[#allocation6 + $0x5]] }
  0x55   : > { %2506 = sst [smem:[#allocation17_spill]] %s2278_s13  ;;  %s2317_s13 = sld [smem:[#allocation6 + $0x6]] }
  0x56   : > { %2507 = sst [smem:[#allocation18_spill]] %s2280_s12  ;;  %s2315_s12 = sld [smem:[#allocation5 + $0x6]] }
  0x57   : > { %2508 = sst [smem:[#allocation19_spill]] %s2284_s30  ;;  %s2313_s30 = sld [smem:[#allocation6 + $0xd]] }
  0x58   : > { %2509 = sst [smem:[#allocation20_spill]] %s2286_s10  ;;  %s2306_s10 = sld [smem:[#allocation4 + $0x6]] }
  0x59   : > { %2510 = sst [smem:[#allocation21_spill]] %s2294_s11  ;;  %s2319_s2 = sld [smem:[#allocation4 + $0xe]] }
  0x5a   : > { %2511 = sst [smem:[#allocation22_spill]] %s2309_s8  ;;  %s2514_s8 = sshll.u32 %s2227_s15, 2 }
  0x5b   : > { %2513 = sst [smem:[#allocation24_spill]] %s2317_s13  ;;  %s2324_s28 = sld [smem:[#allocation5 + $0xe]] }
  0x5c   : > { %s1211_s7 = scalar_lea.vmem [#allocation2], %s2514_s8  ;;  %s2515_s3 = sshll.u32 %s2229_s16, 2 }
  0x5d   : > { %2512 = sst [smem:[#allocation23_spill]] %s2313_s30  ;;  %s1215_s30 = scalar_lea.vmem [#allocation2], %s2515_s3 }
  0x5e   : > { %s2516_s13 = sshll.u32 %s2231_s17, 2  ;;  %s2517_s23 = sshll.u32 %s2233_s18, 2 }
  0x5f   : > { %s1197_s11 = scalar_lea.vmem [#allocation2], %s2516_s13  ;;  %s1201_s4 = scalar_lea.vmem [#allocation2], %s2517_s23 }
  0x60   : > { %s2518_s14 = sshll.u32 %s2235_s19, 2  ;;  %s2520_s15 = sld [smem:[#allocation12_spill]] }
  0x61   : > { %s1099_s8 = scalar_lea.vmem [#allocation2], %s2518_s14  ;;  %s2521_s16 = sshll.u32 %s2239_s21, 2 }
  0x62   : > { %s1085_s17 = scalar_lea.vmem [#allocation2], %s2521_s16  ;;  %s2522_s18 = sshll.u32 %s2241_s0, 2 }
  0x63   : > { %s1089_s1 = scalar_lea.vmem [#allocation2], %s2522_s18  ;;  %s2525_s24 = sld [smem:[#allocation14_spill]] }
  0x64   : > { %s2527_s13 = sld [smem:[#allocation13_spill]]  ;;  %s2529_s14 = sld [smem:[#allocation16_spill]] }
  0x65   : > { %s2354_s0 = sld [smem:[#allocation4 + $0x7]]  ;;  %s1795_s18 = sshll.u32 %s2315_s12, 2 }
  0x66   : > { %s2528_s21 = sshll.u32 %s2520_s15, 2  ;;  %s2530_s25 = sld [smem:[#allocation15_spill]] }
  0x67   : > { %s1229_s29 = scalar_lea.vmem [#allocation2], %s2528_s21  ;;  %s2539_s21 = sld [smem:[#allocation20_spill]] }
  0x69   : > { %v1121_v61 = vstv %s2525_s24 }
  0x6a   : > { %s2534_s16 = sshll.u32 %s2529_s14, 2  ;;  %s2375_s14 = sld [smem:[#allocation6 + $0xe]] }
  0x6c   : > { %v1233_v3 = vstv %s2530_s25  ;;  %s2540_s25 = sshll.u32 %s2292_s6, 2  ;;  %s1798_s6 = sshll.u32 %s2354_s0, 2 }
  0x6d   : > { %v1247_v15 = vstv %s2539_s21  ;;  %s2547_s21 = sld [smem:[#allocation24_spill]] }
 0x116   : > { %v446_v0 = vpop.f32.mrb[0].mxu0 }
 0x117   : > { %451 = vst.msk [vmem:[#allocation2] sm:$0xf] %vm450_vm5, %v446_v0  ;;  %v1875_v1 = vpop.f32.mrb[1].mxu0 }
 0x118   : > { %v534_v20 = vpop.f32.mrb[0].mxu1 }
 0x119   : > { %539 = vst.msk [vmem:[#allocation2 + $0x4] sm:$0xf] %vm450_vm5, %v534_v20  ;;  %v1880_v21 = vpop.f32.mrb[1].mxu1 }
 0x11a   : > { %v622_v22 = vpop.f32.mrb[2].mxu0 }
 0x11b   : > { %627 = vst.msk [vmem:[#allocation2 + $0x8] sm:$0xf] %vm450_vm5, %v622_v22  ;;  %v1885_v23 = vpop.f32.mrb[3].mxu0 }
 0x11c   : > { %v710_v24 = vpop.f32.mrb[2].mxu1 }
 0x11d   : > { %715 = vst.msk [vmem:[#allocation2 + $0xc] sm:$0xf] %vm450_vm5, %v710_v24  ;;  %v1890_v25 = vpop.f32.mrb[3].mxu1 }
 0x11e   : > { %v798_v26 = vpop.f32.mrb[4].mxu0 }
 0x11f   : > { %803 = vst.msk [vmem:[#allocation2 + $0x10] sm:$0xf] %vm450_vm5, %v798_v26  ;;  %v1895_v27 = vpop.f32.mrb[5].mxu0 }
 0x120   : > { %v886_v28 = vpop.f32.mrb[4].mxu1 }
 0x121   : > { %891 = vst.msk [vmem:[#allocation2 + $0x14] sm:$0xf] %vm450_vm5, %v886_v28  ;;  %v1900_v29 = vpop.f32.mrb[5].mxu1 }
 0x122   : > { %v974_v30 = vpop.f32.mrb[6].mxu0 }
 0x123   : > { %979 = vst.msk [vmem:[#allocation2 + $0x18] sm:$0xf] %vm450_vm5, %v974_v30  ;;  %v1905_v31 = vpop.f32.mrb[7].mxu0 }
 0x124   : > { %v1062_v32 = vpop.f32.mrb[6].mxu1  ;;  %v1163_v31 = vstv %s2547_s21  ;;  %s1802_s21 = sld [smem:[#allocation4 + $0x8]] }
 0x125   : > { %1067 = vst.msk [vmem:[#allocation2 + $0x1c] sm:$0xf] %vm450_vm5, %v1062_v32  ;;  %v1910_v33 = vpop.f32.mrb[7].mxu1 }
 0x12c   : > { %v1212_v34 = vld [vmem:[%s1211_s7] sm:$0xf]  ;;  %s2519_s7 = sshll.u32 %s2237_s20, 2  ;;  %s2524_s20 = sshll.u32 %s2259_s5, 2 }
 0x12d   : > { %v1216_v35 = vld [vmem:[%s1215_s30] sm:$0xf]  ;;  %s1103_s3 = scalar_lea.vmem [#allocation2], %s2519_s7  ;;  %s1117_s23 = scalar_lea.vmem [#allocation2], %s2524_s20 }
 0x12e   : > { %v1198_v37 = vld [vmem:[%s1197_s11] sm:$0xf]  ;;  %v1218_v38 = vsub.f32 %v1216_v35, %v1212_v34  ;;  %s2526_s30 = sshll.u32 %s2262_s27, 2  ;;  %s2531_s5 = sld [smem:[#allocation17_spill]]  ;;  %v1275_v35 = vstv %s2375_s14 }
 0x12f   : > { %v1202_v39 = vld [vmem:[%s1201_s4] sm:$0xf]  ;;  %s2523_s4 = sshll.u32 %s2245_s22, 2  ;;  %s1225_s11 = scalar_lea.vmem [#allocation2], %s2526_s30 }
 0x130   : > { %v1100_v41 = vld [vmem:[%s1099_s8] sm:$0xf]  ;;  %v1204_v43 = vsub.f32 %v1202_v39, %v1198_v37  ;;  %s1113_s19 = scalar_lea.vmem [#allocation2], %s2523_s4  ;;  %v1220_v49 = vmul.f32 %v1219_v36, %v1218_v38  ;;  %s2356_s22 = sld [smem:[#allocation5 + $0x7]] }
 0x131   : > { %v1104_v42 = vld [vmem:[%s1103_s3] sm:$0xf]  ;;  %s2358_s8 = sld [smem:[#allocation4 + $0xf]]  ;;  %s2532_s27 = sld [smem:[#allocation18_spill]] }
 0x132   : > { %v1106_v44 = vsub.f32 %v1104_v42, %v1100_v41  ;;  %v1086_v46 = vld [vmem:[%s1085_s17] sm:$0xf]  ;;  %v1206_v55 = vmul.f32 %v1205_v40, %v1204_v43  ;;  %v1221_v56 = vadd.f32 %v1220_v49, %v1212_v34  ;;  %s2360_s7 = sld [smem:[#allocation5 + $0xf]]  ;;  %s2533_s3 = sshll.u32 %s2527_s13, 2 }
 0x133   : > { %v1090_v47 = vld [vmem:[%s1089_s1] sm:$0xf]  ;;  %s1127_s15 = scalar_lea.vmem [#allocation2], %s2533_s3  ;;  %s1131_s17 = scalar_lea.vmem [#allocation2], %s2534_s16 }
 0x134   : > { %v1114_v48 = vld [vmem:[%s1113_s19] sm:$0xf]  ;;  %v1092_v50 = vsub.f32 %v1090_v47, %v1086_v46  ;;  %v1108_v57 = vmul.f32 %v1107_v45, %v1106_v44  ;;  %v1207_v59 = vadd.f32 %v1206_v55, %v1198_v37  ;;  %s2026_s1 = smov 32   ;;  %s2535_s4 = sld [smem:[#allocation19_spill]] }
 0x135   : > { %v1118_v52 = vld [vmem:[%s1117_s23] sm:$0xf]  ;;  %1325 = vrot.lane.b32.xlu1 %v1221_v56, %s2026_s1  ;;  %s2536_s19 = sshll.u32 %s2531_s5, 2  ;;  %s2538_s30 = sld [smem:[#allocation21_spill]] }
 0x136   : > { %v1226_v53 = vld [vmem:[%s1225_s11] sm:$0xf]  ;;  %v1120_v58 = vsub.f32 %v1118_v52, %v1114_v48  ;;  %v1094_v60 = vmul.f32 %v1093_v51, %v1092_v50  ;;  %s1239_s20 = scalar_lea.vmem [#allocation2], %s2536_s19  ;;  %s2027_s11 = smov 16   ;;  %v1109_v6 = vadd.f32 %v1108_v57, %v1100_v41 }
 0x137   : > { %v1230_v54 = vld [vmem:[%s1229_s29] sm:$0xf]  ;;  %s2537_s23 = sshll.u32 %s2532_s27, 2  ;;  %1321 = vrot.lane.b32.xlu0 %v1207_v59, %s2027_s11  ;;  %s1833_s13 = sshll.u32 %s2319_s2, 2 }
 0x138   : > { %v1232_v62 = vsub.f32 %v1230_v54, %v1226_v53  ;;  %v1128_v63 = vld [vmem:[%s1127_s15] sm:$0xf]  ;;  %s1243_s24 = scalar_lea.vmem [#allocation2], %s2537_s23  ;;  %s1835_s29 = sshll.u32 %s2324_s28, 2  ;;  %v1122_v7 = vmul.f32 %v1121_v61, %v1120_v58  ;;  %v1095_v9 = vadd.f32 %v1094_v60, %v1086_v46 }
 0x139   : > { %v1132_v2 = vld [vmem:[%s1131_s17] sm:$0xf]  ;;  %s1141_s5 = scalar_lea.vmem [#allocation2], %s2540_s25  ;;  %s2382_s15 = sld [smem:[#allocation6 + $0x7]]  ;;  %1297 = vrot.lane.b32.xlu1 %v1109_v6, %s2026_s1 }
 0x13a   : > { %v1240_v4 = vld [vmem:[%s1239_s20] sm:$0xf]  ;;  %v1134_v8 = vsub.f32 %v1132_v2, %v1128_v63  ;;  %v1234_v10 = vmul.f32 %v1233_v3, %v1232_v62  ;;  %v1135_v11 = vstv %s2535_s4  ;;  %s2542_s16 = sld [smem:[#allocation22_spill]]  ;;  %s2543_s17 = sshll.u32 %s2301_s26, 2  ;;  %v1123_v18 = vadd.f32 %v1122_v7, %v1114_v48 }
 0x13b   : > { %v1244_v5 = vld [vmem:[%s1243_s24] sm:$0xf]  ;;  %s2541_s27 = sshll.u32 %s2538_s30, 2  ;;  %s1253_s19 = scalar_lea.vmem [#allocation2], %s2543_s17  ;;  %1293 = vrot.lane.b32.xlu0 %v1095_v9, %s2027_s11 }
 0x13c   : > { %v1246_v12 = vsub.f32 %v1244_v5, %v1240_v4  ;;  %v1142_v13 = vld [vmem:[%s1141_s5] sm:$0xf]  ;;  %s1145_s3 = scalar_lea.vmem [#allocation2], %s2541_s27  ;;  %s2544_s20 = sshll.u32 %s2303_s9, 2  ;;  %v1136_v19 = vmul.f32 %v1135_v11, %v1134_v8  ;;  %v1235_v1 = vadd.f32 %v1234_v10, %v1226_v53  ;;  %v2031_v53 = vmov 0  }
 0x13d   : > { %v1146_v14 = vld [vmem:[%s1145_s3] sm:$0xf]  ;;  %s1257_s4 = scalar_lea.vmem [#allocation2], %s2544_s20  ;;  %s1800_s23 = sshll.u32 %s2356_s22, 2  ;;  %1949 = vset.pattern.permute.xlu1 %v2031_v53  ;;  %1948 = vset.pattern.permute.xlu0 %v2031_v53 }
 0x13e   : > { %v1254_v16 = vld [vmem:[%s1253_s19] sm:$0xf]  ;;  %s2545_s24 = sld [smem:[#allocation23_spill]]  ;;  %v1148_v0 = vsub.f32 %v1146_v14, %v1142_v13  ;;  %s1838_s30 = sshll.u32 %s2358_s8, 2  ;;  %v1248_v20 = vmul.f32 %v1247_v15, %v1246_v12  ;;  %v1137_v28 = vadd.f32 %v1136_v19, %v1128_v63 }
 0x13f   : > { %v1258_v17 = vld [vmem:[%s1257_s4] sm:$0xf]  ;;  %s1840_s1 = sshll.u32 %s2360_s7, 2  ;;  %s2546_s26 = sshll.u32 %s2306_s10, 2  ;;  %v1177_v41 = vstv %s2382_s15 }
 0x140   : > { %v1149_v21 = vstv %s2542_s16  ;;  %v1260_v22 = vsub.f32 %v1258_v17, %v1254_v16  ;;  %s1155_s9 = scalar_lea.vmem [#allocation2], %s2546_s26  ;;  %s2548_s11 = sld [smem:[#allocation11_spill]]  ;;  %v1249_v32 = vadd.f32 %v1248_v20, %v1240_v4 }
 0x141   : > { %v1156_v23 = vld [vmem:[%s1155_s9] sm:$0xf]  ;;  %s1159_s25 = scalar_lea.vmem [#allocation2], %s1795_s18  ;;  %s2398_s5 = sld [smem:[#allocation6 + $0xf]]  ;;  %v1150_v29 = vmul.f32 %v1149_v21, %v1148_v0 }
 0x142   : > { %v1160_v24 = vld [vmem:[%s1159_s25] sm:$0xf]  ;;  %s2028_s27 = smov 48   ;;  %s1267_s3 = scalar_lea.vmem [#allocation2], %s1833_s13 }
 0x143   : > { %1301 = vrot.lane.b32.xlu1 %v1123_v18, %s2028_s27  ;;  %v1268_v26 = vld [vmem:[%s1267_s3] sm:$0xf]  ;;  %s1271_s10 = scalar_lea.vmem [#allocation2], %s1835_s29  ;;  %1329 = vrot.lane.b32.xlu0 %v1235_v1, %s2028_s27  ;;  %v1162_v30 = vsub.f32 %v1160_v24, %v1156_v23  ;;  %s1169_s2 = scalar_lea.vmem [#allocation2], %s1798_s6  ;;  %v1151_v43 = vadd.f32 %v1150_v29, %v1142_v13 }
 0x144   : > { %v1261_v25 = vstv %s2545_s24  ;;  %v1272_v27 = vld [vmem:[%s1271_s10] sm:$0xf]  ;;  %s1173_s28 = scalar_lea.vmem [#allocation2], %s1800_s23  ;;  %s2549_s29 = sld [smem:[#allocation25_spill]] }
 0x145   : > { %v1262_v33 = vmul.f32 %v1261_v25, %v1260_v22  ;;  %v1274_v34 = vsub.f32 %v1272_v27, %v1268_v26  ;;  %v1170_v36 = vld [vmem:[%s1169_s2] sm:$0xf]  ;;  %s2029_s17 = smov 64   ;;  %s1281_s19 = scalar_lea.vmem [#allocation2], %s1838_s30  ;;  %v1164_v44 = vmul.f32 %v1163_v31, %v1162_v30 }
 0x146   : > { %s1852_s12 = sshll.u32 %s2548_s11, 3  ;;  %v1174_v37 = vld [vmem:[%s1173_s28] sm:$0xf]  ;;  %s1285_s20 = scalar_lea.vmem [#allocation2], %s1840_s1 }
 0x147   : > { %1305 = vrot.lane.b32.xlu1 %v1137_v28, %s2029_s17  ;;  %v1282_v38 = vld [vmem:[%s1281_s19] sm:$0xf]  ;;  %1333 = vrot.lane.b32.xlu0 %v1249_v32, %s2029_s17  ;;  %v1176_v45 = vsub.f32 %v1174_v37, %v1170_v36  ;;  %s2550_s8 = sld [smem:[#allocation28_spill]]  ;;  %v1263_v47 = vadd.f32 %v1262_v33, %v1254_v16  ;;  %v1276_v48 = vmul.f32 %v1275_v35, %v1274_v34  ;;  %s2030_s7 = smov 80   ;;  %v1289_v50 = vstv %s2398_s5 }
 0x148   : > { %v1286_v39 = vld [vmem:[%s1285_s20] sm:$0xf]  ;;  %v1165_v51 = vadd.f32 %v1164_v44, %v1156_v23  ;;  %s2032_s14 = smov 96   ;;  %s2033_s15 = smov 112  }
 0x149   : > { %v1288_v49 = vsub.f32 %v1286_v39, %v1282_v38  ;;  %v1178_v52 = vmul.f32 %v1177_v41, %v1176_v45  ;;  %v1277_v54 = vadd.f32 %v1276_v48, %v1268_v26  ;;  %s2551_s23 = sld [smem:[#allocation31_spill]]  ;;  %s2552_s1 = sld [smem:[#allocation29_spill]] }
 0x14a   : > { %s338_s16 = scalar_lea.vmem %s2549_s29, %s1852_s12  ;;  %s1069_s26 = sld [smem:[#allocation4]] }
 0x14b   : > { %v2421_v40 = vld [vmem:[%s338_s16] sm:$0xff]  ;;  %1309 = vrot.lane.b32.xlu1 %v1151_v43, %s2030_s7  ;;  %1337 = vrot.lane.b32.xlu0 %v1263_v47, %s2030_s7  ;;  %v1290_v55 = vmul.f32 %v1289_v50, %v1288_v49  ;;  %v1179_v56 = vadd.f32 %v1178_v52, %v1170_v36  ;;  %s1073_s9 = sld [smem:[#allocation5]]  ;;  %s1803_s3 = sshll.u32 %s1802_s21, 2 }
 0x14c   : > { %v2426_v42 = vcombine.high %v2421_v40, %v2421_v40  ;;  %s1804_s25 = sld [smem:[#allocation5 + $0x8]]  ;;  %s1183_s29 = scalar_lea.vmem [#allocation2], %s1803_s3 }
 0x14d   : > { %v1370_v46 = vld [vmem:[%s2550_s8] sm:$0xff]  ;;  %v1291_v57 = vadd.f32 %v1290_v55, %v1282_v38  ;;  %s1806_s2 = sld [smem:[#allocation6 + $0x8]]  ;;  %s2554_s8 = sld [smem:[#allocation32_spill]] }
 0x14e   : > { %1842 = vmatprep.subr.msk.mxu0 %vm1383_vm6, %v2426_v42  ;;  %s1077_s28 = sld [smem:[#allocation6]]  ;;  %v1184_v3 = vld [vmem:[%s1183_s29] sm:$0xf] }
 0x14f   : > { %1843 = vmatpush1.msk.msra.mxu0 %vm1383_vm6, %v2421_v40  ;;  %1313 = vrot.lane.b32.xlu1 %v1165_v51, %s2032_s14  ;;  %v1460_v58 = vld [vmem:[%s2551_s23] sm:$0xff]  ;;  %s2553_s20 = sld [smem:[#allocation30_spill]] }
 0x150   : > { %1844 = vmatmul.mubr.msk.f32.vlgmr.msra.gmra.mrb[8].mxu0 %vm1379_vm7, %v1370_v46  ;;  %1341 = vrot.lane.b32.xlu0 %v1277_v54, %s2032_s14  ;;  %v1371_v59 = vld [vmem:[%s2552_s1] sm:$0xff]  ;;  %s1765_s5 = sshll.u32 %s1069_s26, 2 }
 0x151   : > { %s1766_s27 = sshll.u32 %s1073_s9, 2  ;;  %s1071_s18 = scalar_lea.vmem [#allocation2], %s1765_s5 }
 0x152   : > { %s1805_s10 = sshll.u32 %s1804_s25, 2  ;;  %v1072_v63 = vld [vmem:[%s1071_s18] sm:$0xf]  ;;  %s1075_s13 = scalar_lea.vmem [#allocation2], %s1766_s27 }
 0x153   : > { %1317 = vrot.lane.b32.xlu1 %v1179_v56, %s2033_s15  ;;  %v1076_v2 = vld [vmem:[%s1075_s13] sm:$0xf]  ;;  %s1187_s16 = scalar_lea.vmem [#allocation2], %s1805_s10  ;;  %v1191_v10 = vstv %s1806_s2  ;;  %s353_s7 = scalar_lea.vmem %s2554_s8, %s1852_s12 }
 0x154   : > { %1345 = vrot.lane.b32.xlu0 %v1291_v57, %s2033_s15  ;;  %v1188_v4 = vld [vmem:[%s1187_s16] sm:$0xf]  ;;  %v1078_v6 = vsub.f32 %v1076_v2, %v1072_v63  ;;  %v1079_v8 = vstv %s1077_s28 }
 0x155   : > { %v1190_v7 = vsub.f32 %v1188_v4, %v1184_v3  ;;  %v1459_v36 = vld [vmem:[%s2553_s20] sm:$0xff] }
 0x156   : > { %v1080_v12 = vmul.f32 %v1079_v8, %v1078_v6 }
 0x157   : > { %1463 = vperm.xlu1 %1949, %v1460_v58   ;;  %v1192_v13 = vmul.f32 %v1191_v10, %v1190_v7 }
 0x158   : > { %1374 = vperm.xlu0 %1948, %v1371_v59   ;;  %v1081_v16 = vadd.f32 %v1080_v12, %v1072_v63 }
 0x159   : > { %v1193_v17 = vadd.f32 %v1192_v13, %v1184_v3 }
 0x1a7   : > { %v1326_v60 = vpop.permute.xlu1 %1325 }
 0x1a9   : > { %v1322_v61 = vpop.permute.xlu0 %1321 }
 0x1aa   : > { %v1362_v1 = vsel %vm1348_vm8, %v1193_v17, %v1322_v61 }
 0x1ab   : > { %v1298_v62 = vpop.permute.xlu1 %1297  ;;  %v1363_v23 = vsel %vm1350_vm9, %v1362_v1, %v1326_v60 }
 0x1ad   : > { %v1294_v5 = vpop.permute.xlu0 %1293 }
 0x1ae   : > { %v1349_v19 = vsel %vm1348_vm8, %v1081_v16, %v1294_v5 }
 0x1af   : > { %v1351_v20 = vsel %vm1350_vm9, %v1349_v19, %v1298_v62 }
 0x1b5   : > { %v1302_v9 = vpop.permute.xlu1 %1301  ;;  %v1330_v11 = vpop.permute.xlu0 %1329 }
 0x1b6   : > { %v1353_v22 = vsel %vm1352_vm10, %v1351_v20, %v1302_v9  ;;  %v1364_v25 = vsel %vm1352_vm10, %v1363_v23, %v1330_v11 }
 0x1b9   : > { %v1306_v14 = vpop.permute.xlu1 %1305  ;;  %v1334_v15 = vpop.permute.xlu0 %1333 }
 0x1ba   : > { %v1355_v26 = vsel %vm1354_vm11, %v1353_v22, %v1306_v14  ;;  %v1365_v27 = vsel %vm1354_vm11, %v1364_v25, %v1334_v15 }
 0x1bd   : > { %v1310_v18 = vpop.permute.xlu1 %1309  ;;  %v1338_v0 = vpop.permute.xlu0 %1337 }
 0x1be   : > { %v1357_v28 = vsel %vm1356_vm12, %v1355_v26, %v1310_v18  ;;  %v1366_v29 = vsel %vm1356_vm12, %v1365_v27, %v1338_v0 }
 0x1c1   : > { %v1314_v21 = vpop.permute.xlu1 %1313 }
 0x1c2   : > { %v1342_v24 = vpop.permute.xlu0 %1341  ;;  %v1359_v30 = vsel %vm1358_vm13, %v1357_v28, %v1314_v21 }
 0x1c3   : > { %v1367_v32 = vsel %vm1358_vm13, %v1366_v29, %v1342_v24 }
 0x1c5   : > { %v1318_v31 = vpop.permute.xlu1 %1317 }
 0x1c6   : > { %v1361_v33 = vsel %vm1360_vm14, %v1359_v30, %v1318_v31  ;;  %v1346_v34 = vpop.permute.xlu0 %1345 }
 0x1c7   : > { %v1368_v35 = vsel %vm1360_vm14, %v1367_v32, %v1346_v34  ;;  %v1573_v7 = vsub.f32 %v1361_v33, %v2421_v40 }
 0x1c8   : > { %1845 = vmatprep.subr.msk.mxu1 %vm1383_vm6, %v1368_v35  ;;  %v1574_v9 = vsub.f32 %v1368_v35, %v2426_v42 }
 0x1c9   : > { %1846 = vmatpush1.msk.msra.mxu1 %vm1383_vm6, %v1361_v33 }
 0x1ca   : > { %1847 = vmatmul.mubr.msk.f32.vlgmr.msra.gmra.mrb[8].mxu1 %vm1379_vm7, %v1459_v36 }
 0x1d6   : > { %v1464_v41 = vpop.permute.xlu1 %1463 }
 0x1d7   : > { %v1375_v39 = vpop.permute.xlu0 %1374 }
 0x223   : > { %v1454_v37 = vpop.f32.mrb[8].mxu0 }
 0x224   : > { %v1456_v38 = vpop.f32.mrb[9].mxu0  ;;  %v1455_v43 = vadd.f32 %v1454_v37, %v1375_v39 }
 0x225   : > { %v1457_v45 = vadd.f32 %v1456_v38, %v1375_v39 }
 0x29d   : > { %v1541_v44 = vpop.f32.mrb[8].mxu1 }
 0x29e   : > { %v1542_v46 = vadd.f32 %v1541_v44, %v1464_v41  ;;  %v1543_v47 = vpop.f32.mrb[9].mxu1 }
 0x29f   : > { %v1544_v48 = vadd.f32 %v1543_v47, %v1464_v41 }
 0x2a0   : > { %v1546_v49 = vmul.f32 %v1542_v46, %v1455_v43 }
 0x2a1   : > { %v1547_v50 = vmul.f32 %v1544_v48, %v1457_v45 }
 0x2a2   : > { %v1548_v51 = vrot.slane %v1546_v49, 4 }
 0x2a3   : > { %v1554_v52 = vrot.slane %v1547_v50, 4 }
 0x2a4   : > { %v1549_v53 = vadd.f32 %v1548_v51, %v1546_v49 }
 0x2a5   : > { %v1555_v54 = vadd.f32 %v1554_v52, %v1547_v50 }
 0x2a6   : > { %v1550_v55 = vrot.slane %v1549_v53, 2 }
 0x2a7   : > { %v1556_v56 = vrot.slane %v1555_v54, 2 }
 0x2a8   : > { %v1551_v57 = vadd.f32 %v1550_v55, %v1549_v53 }
 0x2a9   : > { %v1557_v58 = vadd.f32 %v1556_v56, %v1555_v54 }
 0x2aa   : > { %v1552_v59 = vrot.slane %v1551_v57, 1 }
 0x2ab   : > { %v1558_v60 = vrot.slane %v1557_v58, 1 }
 0x2ac   : > { %v1553_v61 = vadd.f32 %v1552_v59, %v1551_v57 }
 0x2ad   : > { %v1559_v62 = vadd.f32 %v1558_v60, %v1557_v58 }
 0x2ae   : > { %v1848_v63 = vmul.f32 -1.442695, %v1553_v61 }
 0x2af   : > { %v1849_v2 = vmul.f32 -1.442695, %v1559_v62 }
 0x2b0   : > { %1951 = vpow2.f32 %v1848_v63 }
 0x2b1   : > { %1953 = vpow2.f32 %v1849_v2 }
 0x2ba   : > { %v1952_v3 = vpop.eup %1951 }
 0x2bb   : > { %v1954_v4 = vpop.eup %1953  ;;  %v1566_v5 = vadd.f32 1.0, %v1952_v3 }
 0x2bc   : > { %v1567_v6 = vadd.f32 1.0, %v1954_v4 }
 0x2bd   : > { %1955 = vrcp.f32 %v1566_v5 }
 0x2be   : > { %1957 = vrcp.f32 %v1567_v6 }
 0x2c7   : > { %v1956_v8 = vpop.eup %1955 }
 0x2c8   : > { %v1958_v10 = vpop.eup %1957  ;;  %v1575_v11 = vmul.f32 %v1956_v8, %v1573_v7 }
 0x2c9   : > { %v1576_v12 = vmul.f32 %v1958_v10, %v1574_v9 }
 0x2cb   : > { %v1579_v13 = vcombine.low %v1575_v11, %v1576_v12 }
 0x2cd   : > { %v1581_v14 = vadd.f32 %v1579_v13, %v2421_v40 }
 0x2cf   : > { %1582 = vst [vmem:[%s353_s7] sm:$0xff] %v1581_v14 }
 0x2d0 PF: > { %s2555_s14 = sld [smem:[#allocation9_spill]]  ;;  %s2556_s26 = sld [smem:[#allocation8_spill]] }
 0x2d1   : > { %s2557_s27 = sld [smem:[#allocation10_spill]] }
 0x2d6   : > { %s34_s28 = sadd.s32 1, %s2555_s14  }
 0x2d7   : > { %p31_p6 = scmp.ge.s32.totalorder %s34_s28, 4  }
 0x2d9   :  { %33 = sbr.rel (!%p31_p6) target bundleno = 40 (0x28), region = 124 }

</bundles_post_ra>
